<compile_context>
chip_gen: v7x
topology: tpu7x:2x2x1
jax: 0.10.0
libtpu: 0.0.40
codegen_flags: <defaults>
</compile_context>

<pallas_src>
import functools

import jax
import jax.numpy as jnp
from jax.experimental import pallas as pl
from jax.experimental.pallas import tpu as pltpu

_EPS_LN = 1e-5
_LANE = 128
_VMEM_LIMIT = 32 * 1024 * 1024   # conservative: fits v5e/v6e (128 MiB) and v7x (64 MiB)


# ----------------------------------------------------------------------------
# Small helpers
# ----------------------------------------------------------------------------
def _round_up(x, m):
    return ((x + m - 1) // m) * m


def _full_spec(arr):
    nd = arr.ndim
    return pl.BlockSpec(arr.shape, lambda *_: (0,) * nd)


def _pad_rows(x, n_pad):
    return jnp.pad(x, ((0, n_pad - x.shape[0]), (0, 0)))


def _gat_row_tiling(n):
    # rows >= 32 so int8 mask blocks are layout-native; row tile capped at 128
    n_min = _round_up(max(n, 1), 32)
    tile = min(128, n_min)
    return _round_up(n, tile), tile


def _dnn_row_tiling(n):
    n_min = _round_up(max(n, 1), 8)
    tile = min(128, n_min)
    return _round_up(n, tile), tile


# ----------------------------------------------------------------------------
# Pallas kernels
# ----------------------------------------------------------------------------
def _node_transform_kernel(x_ref, w_ref, b_ref, o_ref):
    # one grid step per node type: (N_pad, D_pad) @ (D_pad, hid) + bias
    o_ref[0] = jnp.dot(x_ref[0].astype(jnp.bfloat16), w_ref[0],
                       preferred_element_type=jnp.float32) + b_ref[0]


def _gat_head_kernel(*refs, num_rel, inv_count):
    # One destination-row tile: every incident relation's GATConv + stack/mean.
    #   refs = dst_tile, [src, mask_i8, feat_w, feat_b, att_wd, att_ws, att_b,
    #                     gat_bias] * num_rel, out_tile
    dst_ref = refs[0]
    o_ref = refs[-1]
    dst = dst_ref[...]
    tile_nd = dst.shape[0]
    dst_bf = dst.astype(jnp.bfloat16)
    acc = dst                                       # original-feature term of the mean
    for k in range(num_rel):
        (src_ref, mask_ref, fw_ref, fb_ref,
         awd_ref, aws_ref, ab_ref, gb_ref) = refs[1 + 8 * k: 1 + 8 * (k + 1)]
        # dst & src share feat_w -> one MXU matmul on the concatenated rows
        both = jnp.concatenate([dst_bf, src_ref[...].astype(jnp.bfloat16)], axis=0)
        proj = jnp.dot(both, fw_ref[...],
                       preferred_element_type=jnp.float32) + fb_ref[...]
        dst_h = proj[:tile_nd]
        src_h = proj[tile_nd:]
        # attention logits via VPU multiply + row-sum (no 1-lane-wide MXU output)
        sd = jnp.sum(dst_h * awd_ref[...], axis=-1, keepdims=True)       # (tile_nd,1)
        ss = jnp.sum(src_h * aws_ref[...], axis=-1, keepdims=True)       # (Ns_pad,1)
        scores = jnp.tanh(sd + jnp.transpose(ss) + ab_ref[...])          # (tile_nd,Ns_pad)
        # tanh in [-1,1] -> exp never overflows; no max-subtraction needed
        p = jnp.where(mask_ref[...] != 0, jnp.exp(scores), 0.0)
        denom = jnp.sum(p, axis=-1, keepdims=True)
        inv = pl.reciprocal(jnp.where(denom > 0.0, denom, 1.0), approx=True)
        agg = jnp.dot(p.astype(jnp.bfloat16), src_h.astype(jnp.bfloat16),
                      preferred_element_type=jnp.float32)
        # rows with no incident edges: agg == 0 -> contribution is just the bias,
        # matching torch.sparse.mm(attention, src_h) + bias semantics
        acc = acc + agg * inv + gb_ref[...]
    o_ref[...] = acc * inv_count


def _res_dnn_fused_kernel(x_ref, pw_ref, pb_ref, dw_ref, db_ref, dg_ref, dbe_ref,
                          rg_ref, rb_ref, cw_ref, cb_ref, o_ref,
                          *, num_blocks, dnns_per_block):
    # prepare -> [(dense->tanh->LN) x D, +shortcut->tanh->LN] x B
    #         -> classifier (lane-padded to 128) -> sigmoid
    def dense(x, w, b):
        return jnp.dot(x.astype(jnp.bfloat16), w,
                       preferred_element_type=jnp.float32) + b

    def layer_norm(h, g, beta):
        mu = jnp.mean(h, axis=-1, keepdims=True)
        var = jnp.mean((h - mu) ** 2, axis=-1, keepdims=True)
        return (h - mu) * jax.lax.rsqrt(var + _EPS_LN) * g + beta

    h = dense(x_ref[...], pw_ref[...], pb_ref[...])
    li = 0
    for blk in range(num_blocks):
        shortcut = h
        for _ in range(dnns_per_block):
            h = layer_norm(jnp.tanh(dense(h, dw_ref[li], db_ref[li])),
                           dg_ref[li], dbe_ref[li])
            li += 1
        h = layer_norm(jnp.tanh(shortcut + h), rg_ref[blk], rb_ref[blk])
    o_ref[...] = jax.nn.sigmoid(dense(h, cw_ref[...], cb_ref[...]))


# ----------------------------------------------------------------------------
# pallas_call wrappers
# ----------------------------------------------------------------------------
def pallas_node_transform(x_stacked, w_stacked, b_stacked):
    T, n_stack, d_pad = x_stacked.shape
    hid = w_stacked.shape[-1]
    return pl.pallas_call(
        _node_transform_kernel,
        out_shape=jax.ShapeDtypeStruct((T, n_stack, hid), jnp.float32),
        grid=(T,),
        in_specs=[pl.BlockSpec((1, n_stack, d_pad), lambda t: (t, 0, 0)),
                  pl.BlockSpec((1, d_pad, hid), lambda t: (t, 0, 0)),
                  pl.BlockSpec((1, 1, hid), lambda t: (t, 0, 0))],
        out_specs=pl.BlockSpec((1, n_stack, hid), lambda t: (t, 0, 0)),
        compiler_params=pltpu.CompilerParams(
            dimension_semantics=("parallel",),
            vmem_limit_bytes=_VMEM_LIMIT),
    )(x_stacked, w_stacked, b_stacked)


def pallas_gat_head_update(gat_params, features, head, rels, n_empty, hid):
    # One fused, row-tiled kernel per (hop, head node type).
    dst = features[head]
    nd = dst.shape[0]
    nd_pad, tile_nd = _gat_row_tiling(nd)
    num_rel = len(rels)
    inv_count = 1.0 / float(1 + num_rel + n_empty)   # empty-edge relations add zeros

    args = [_pad_rows(dst, nd_pad)]
    in_specs = [pl.BlockSpec((tile_nd, hid), lambda i: (i, 0))]
    for rel, tail, edges in rels:
        src = features[tail]
        ns_pad = _round_up(src.shape[0], _LANE)          # lane-dense scores / mask
        src_pad = _pad_rows(src, ns_pad)
        # Static edge list -> dense {0,1} int8 mask, built once outside the kernel.
        # TODO(synk): duplicate (dst,src) pairs collapse to a single edge.
        mask = jnp.zeros((nd_pad, ns_pad), jnp.int8).at[
            edges[0].astype(jnp.int32), edges[1].astype(jnp.int32)].set(1)
        gp = gat_params[rel]
        args += [src_pad, mask, gp['feat_w'], gp['feat_b'],
                 gp['att_wd'], gp['att_ws'], gp['att_b'], gp['bias']]
        in_specs += [_full_spec(src_pad),
                     pl.BlockSpec((tile_nd, ns_pad), lambda i: (i, 0)),
                     _full_spec(gp['feat_w']), _full_spec(gp['feat_b']),
                     _full_spec(gp['att_wd']), _full_spec(gp['att_ws']),
                     _full_spec(gp['att_b']), _full_spec(gp['bias'])]

    kernel = functools.partial(_gat_head_kernel, num_rel=num_rel, inv_count=inv_count)
    out = pl.pallas_call(
        kernel,
        out_shape=jax.ShapeDtypeStruct((nd_pad, hid), jnp.float32),
        grid=(nd_pad // tile_nd,),
        in_specs=in_specs,
        out_specs=pl.BlockSpec((tile_nd, hid), lambda i: (i, 0)),
        compiler_params=pltpu.CompilerParams(
            dimension_semantics=("parallel",),
            vmem_limit_bytes=_VMEM_LIMIT),
    )(*args)
    return out[:nd]


def pallas_res_dnn(p, x, meta):
    n, hid = x.shape
    out_pad = p['cls_w_pad'].shape[1]
    rows_pad, tile = _dnn_row_tiling(n)
    x_pad = _pad_rows(x, rows_pad)
    weights = (p['prepare_w'], p['prepare_b'],
               p['dnn_w'], p['dnn_b'], p['dnn_gamma'], p['dnn_beta'],
               p['res_gamma'], p['res_beta'],
               p['cls_w_pad'], p['cls_b_pad'])
    kernel = functools.partial(_res_dnn_fused_kernel,
                               num_blocks=meta['num_blocks'],
                               dnns_per_block=meta['dnns_per_block'])
    out = pl.pallas_call(
        kernel,
        out_shape=jax.ShapeDtypeStruct((rows_pad, out_pad), jnp.float32),
        grid=(rows_pad // tile,),
        in_specs=[pl.BlockSpec((tile, hid), lambda i: (i, 0))]
                 + [_full_spec(w) for w in weights],
        out_specs=pl.BlockSpec((tile, out_pad), lambda i: (i, 0)),
        compiler_params=pltpu.CompilerParams(
            dimension_semantics=("parallel",),
            vmem_limit_bytes=_VMEM_LIMIT),
    )(x_pad, *weights)
    return out[:n, :meta['out_dim']]     # drop row/lane padding of the classifier


# ----------------------------------------------------------------------------
# Parameter construction (deterministic, synthetic)
# ----------------------------------------------------------------------------
def _init_linear(key, din, dout, scale=0.1):
    kw, kb = jax.random.split(key)
    w = scale * jax.random.normal(kw, (din, dout), jnp.float32)
    b = scale * jax.random.normal(kb, (dout,), jnp.float32)
    return w, b


def init_rgat_params(key, node_type_to_feature_len, relation_list, type_order,
                     hid, num_res_dnn, each_res_dnn_num):
    assert hid % _LANE == 0, "hid must be a multiple of 128 (lane-dense)"
    params = {'gat': {}}

    # node transforms: stacked + zero-padded so ONE pallas_call handles all types
    T = len(type_order)
    d_pad = _round_up(max(node_type_to_feature_len[nt] for nt in type_order), 8)
    node_w = jnp.zeros((T, d_pad, hid), jnp.float32)
    node_b = jnp.zeros((T, 1, hid), jnp.float32)
    for t, nt in enumerate(type_order):
        key, sub = jax.random.split(key)
        din = node_type_to_feature_len[nt]
        w, b = _init_linear(sub, din, hid)
        node_w = node_w.at[t, :din, :].set(w)
        node_b = node_b.at[t, 0, :].set(b)
    params['node_w'] = node_w.astype(jnp.bfloat16)     # weights resident in bf16
    params['node_b'] = node_b

    # per-relation GATConv
    for rel in relation_list:
        key, k1, k2, k3 = jax.random.split(key, 4)
        fw, fb = _init_linear(k1, hid, hid)
        # att = Linear(2*hid, 1): weight (1, 2*hid) split into dst half / src half
        aw = 0.1 * jax.random.normal(k2, (1, 2 * hid), jnp.float32)
        ab = 0.1 * jax.random.normal(k3, (1, 1), jnp.float32)
        params['gat'][rel] = {
            'feat_w': fw.astype(jnp.bfloat16), 'feat_b': fb.reshape(1, -1),
            'att_wd': aw[:, :hid], 'att_ws': aw[:, hid:], 'att_b': ab,
            'bias': jnp.zeros((1, hid), jnp.float32),   # reset_parameters -> fill_(0)
        }

    # Res_DNN + classifier (lane-padded to 128)
    key, kp, kc = jax.random.split(key, 3)
    pw, pb = _init_linear(kp, hid, hid)
    dnn_w, dnn_b, dnn_g, dnn_beta = [], [], [], []
    res_g, res_beta = [], []
    for _ in range(num_res_dnn):
        for _ in range(each_res_dnn_num):
            key, kd = jax.random.split(key)
            dw, db = _init_linear(kd, hid, hid)
            dnn_w.append(dw)
            dnn_b.append(db.reshape(1, -1))
            dnn_g.append(jnp.ones((1, hid), jnp.float32))
            dnn_beta.append(jnp.zeros((1, hid), jnp.float32))
        res_g.append(jnp.ones((1, hid), jnp.float32))
        res_beta.append(jnp.zeros((1, hid), jnp.float32))
    cw, cb = _init_linear(kc, hid, 1)
    out_dim = 1
    out_pad = _round_up(out_dim, _LANE)
    cw_pad = jnp.zeros((hid, out_pad), jnp.float32).at[:, :out_dim].set(cw)
    cb_pad = jnp.zeros((1, out_pad), jnp.float32).at[:, :out_dim].set(cb.reshape(1, -1))

    params['res_dnn'] = {
        'prepare_w': pw.astype(jnp.bfloat16), 'prepare_b': pb.reshape(1, -1),
        'dnn_w': jnp.stack(dnn_w).astype(jnp.bfloat16), 'dnn_b': jnp.stack(dnn_b),
        'dnn_gamma': jnp.stack(dnn_g), 'dnn_beta': jnp.stack(dnn_beta),
        'res_gamma': jnp.stack(res_g), 'res_beta': jnp.stack(res_beta),
        'cls_w_pad': cw_pad.astype(jnp.bfloat16), 'cls_b_pad': cb_pad,
    }
    return params


# ----------------------------------------------------------------------------
# RGAT forward (mirrors the PyTorch module, eval mode) — single jit
# ----------------------------------------------------------------------------
def make_rgat_forward(meta):
    hid = meta['hid']
    type_order = meta['type_order']

    def _node_transform_all(params, feature_dict):
        T = len(type_order)
        d_pad = params['node_w'].shape[1]
        n_stack = _round_up(max(feature_dict[nt].shape[0] for nt in type_order), 8)
        x = jnp.zeros((T, n_stack, d_pad), jnp.float32)
        for t, nt in enumerate(type_order):
            f = feature_dict[nt]
            x = x.at[t, :f.shape[0], :f.shape[1]].set(f)
        out = pallas_node_transform(x, params['node_w'], params['node_b'])
        return {nt: out[t, :feature_dict[nt].shape[0], :]
                for t, nt in enumerate(type_order)}

    def forward(params, feature_dict, adj_dict, target_idx):
        features = _node_transform_all(params, feature_dict)

        for hop in reversed(sorted(adj_dict.keys())):
            # group this hop's relations by destination (head) node type
            per_head = {}
            for rel, edges in adj_dict[hop].items():
                head = meta['rel_head'][rel]
                tail = meta['rel_tail'][rel]
                entry = per_head.setdefault(head, {'rels': [], 'n_empty': 0})
                if edges.shape[1] > 0:
                    entry['rels'].append((rel, tail, edges))
                else:
                    # original torch branch builds zeros; contributes only to the
                    # mean denominator here
                    entry['n_empty'] += 1
            new_feats = {head: pallas_gat_head_update(params['gat'], features, head,
                                                      e['rels'], e['n_empty'], hid)
                         for head, e in per_head.items()}
            features.update(new_feats)

        h_prime = features[meta['target_type']][target_idx]
        return pallas_res_dnn(params['res_dnn'], h_prime, meta)

    return jax.jit(forward)


# ----------------------------------------------------------------------------
# Example run
# ----------------------------------------------------------------------------
if __name__ == "__main__":
    key = jax.random.PRNGKey(0)

    node_type_to_feature_len = {'user': 6, 'item': 10}
    type_order = ['user', 'item']
    relation_list = ['buys', 'bought_by']
    HID = 128          # lane-dense hidden width (multiple of 128)
    NUM_RES_DNN = 2
    EACH_RES_DNN = 2

    n_user, n_item = 8, 12
    key, ku, ki = jax.random.split(key, 3)
    user_feat = jax.random.normal(ku, (n_user, 6), jnp.float32)
    item_feat = jax.random.normal(ki, (n_item, 10), jnp.float32)

    # edges: row 0 = destination (head-type node) indices, row 1 = source (tail-type)
    buys_h0 = jnp.array([[0, 0, 1, 2, 3, 4, 5, 6, 7, 7],
                         [1, 2, 3, 4, 5, 6, 7, 8, 9, 10]], jnp.int32)
    bb_h0 = jnp.array([[0, 1, 2, 3, 4, 5, 6, 7, 8],
                       [0, 1, 2, 3, 4, 5, 6, 7, 0]], jnp.int32)
    buys_h1 = jnp.array([[0, 1, 1, 2, 3, 5, 6, 7],
                         [0, 0, 11, 6, 7, 2, 3, 4]], jnp.int32)
    bb_h1 = jnp.array([[9, 10, 11, 0, 2, 4, 6],
                       [1, 2, 3, 4, 5, 6, 7]], jnp.int32)

    feature_dict = {'user': user_feat, 'item': item_feat}
    adj_dict = {0: {'buys': buys_h0, 'bought_by': bb_h0},
                1: {'buys': buys_h1, 'bought_by': bb_h1}}
    target_idx = jnp.array([0, 1, 2, 3], jnp.int32)

    meta = {
        'hid': HID,
        'type_order': type_order,
        'rel_head': {'buys': 'user', 'bought_by': 'item'},
        'rel_tail': {'buys': 'item', 'bought_by': 'user'},
        'target_type': 'user',
        'out_dim': 1,
        'num_blocks': NUM_RES_DNN,
        'dnns_per_block': EACH_RES_DNN,
    }

    key, kp = jax.random.split(key)
    params = init_rgat_params(kp, node_type_to_feature_len, relation_list,
                              type_order, HID, NUM_RES_DNN, EACH_RES_DNN)

    rgat_forward = make_rgat_forward(meta)
    out = rgat_forward(params, feature_dict, adj_dict, target_idx)
    out = jax.block_until_ready(out)

    assert out.shape == (4, 1)
    assert bool(jnp.all(jnp.isfinite(out)))
    assert bool(jnp.all((out > 0.0) & (out < 1.0)))
    print("KERNEL_OK")
</pallas_src>

<mosaic_0001>
module attributes {stable_mosaic.version = 11 : i64} {
  func.func @_node_transform_kernel(%arg0: i32, %arg1: memref<1x16x16xf32, #tpu.memory_space<vmem>>, %arg2: memref<1x16x128xbf16, #tpu.memory_space<vmem>>, %arg3: memref<1x1x128xf32, #tpu.memory_space<vmem>>, %arg4: memref<1x16x128xf32, #tpu.memory_space<vmem>>) attributes {dimension_semantics = [#tpu.dimension_semantics<parallel>], iteration_bounds = array<i64: 2>, scalar_prefetch = 0 : i64, scratch_operands = 0 : i64, tpu.core_type = #tpu.core_type<tc>, window_params = [{transform_indices = @transform_0, window_bounds = array<i64: 1, 16, 16>}, {transform_indices = @transform_1, window_bounds = array<i64: 1, 16, 128>}, {transform_indices = @transform_2, window_bounds = array<i64: 1, 1, 128>}, {transform_indices = @transform_3, window_bounds = array<i64: 1, 16, 128>}]} {
    %c0 = arith.constant 0 : index
    %c0_0 = arith.constant 0 : index
    %c0_1 = arith.constant 0 : index
    %0 = vector.load %arg1[%c0, %c0_0, %c0_1] : memref<1x16x16xf32, #tpu.memory_space<vmem>>, vector<1x16x16xf32>
    %1 = vector.shape_cast %0 : vector<1x16x16xf32> to vector<16x16xf32>
    %2 = arith.truncf %1 : vector<16x16xf32> to vector<16x16xbf16>
    %c0_2 = arith.constant 0 : index
    %c0_3 = arith.constant 0 : index
    %c0_4 = arith.constant 0 : index
    %3 = vector.load %arg2[%c0_2, %c0_3, %c0_4] : memref<1x16x128xbf16, #tpu.memory_space<vmem>>, vector<1x16x128xbf16>
    %4 = vector.shape_cast %3 : vector<1x16x128xbf16> to vector<16x128xbf16>
    %cst = arith.constant dense<0.000000e+00> : vector<16x128xf32>
    %5 = tpu.matmul %2, %4, %cst {dimension_numbers = #tpu.dot_dimension_numbers<[1], [0], [0], [1], [0, 0, 1, 1], [], []>} : vector<16x16xbf16>, vector<16x128xbf16>, vector<16x128xf32> -> vector<16x128xf32>
    %c0_5 = arith.constant 0 : index
    %c0_6 = arith.constant 0 : index
    %c0_7 = arith.constant 0 : index
    %6 = vector.load %arg3[%c0_5, %c0_6, %c0_7] : memref<1x1x128xf32, #tpu.memory_space<vmem>>, vector<1x1x128xf32>
    %7 = vector.shape_cast %6 : vector<1x1x128xf32> to vector<1x128xf32>
    %8 = vector.broadcast %7 : vector<1x128xf32> to vector<16x128xf32>
    %9 = arith.addf %5, %8 : vector<16x128xf32>
    %c0_8 = arith.constant 0 : index
    %c0_9 = arith.constant 0 : index
    %c0_10 = arith.constant 0 : index
    %10 = vector.load %arg4[%c0_8, %c0_9, %c0_10] : memref<1x16x128xf32, #tpu.memory_space<vmem>>, vector<1x16x128xf32>
    %11 = vector.shape_cast %10 : vector<1x16x128xf32> to vector<16x128xf32>
    %12 = vector.shape_cast %9 : vector<16x128xf32> to vector<1x16x128xf32>
    tpu.vector_store %arg4[%c0_8, %c0_9, %c0_10], %12 {strides = array<i32>} : memref<1x16x128xf32, #tpu.memory_space<vmem>>, vector<1x16x128xf32>,
    return
  }
  func.func @transform_0(%arg0: i32) -> (i32, i32, i32) {
    %c0_i32 = arith.constant 0 : i32
    %c0_i32_0 = arith.constant 0 : i32
    %c0_i32_1 = arith.constant 0 : i32
    return %arg0, %c0_i32, %c0_i32_0 : i32, i32, i32
  }
  func.func @transform_1(%arg0: i32) -> (i32, i32, i32) {
    %c0_i32 = arith.constant 0 : i32
    %c0_i32_0 = arith.constant 0 : i32
    %c0_i32_1 = arith.constant 0 : i32
    return %arg0, %c0_i32, %c0_i32_0 : i32, i32, i32
  }
  func.func @transform_2(%arg0: i32) -> (i32, i32, i32) {
    %c0_i32 = arith.constant 0 : i32
    %c0_i32_0 = arith.constant 0 : i32
    %c0_i32_1 = arith.constant 0 : i32
    return %arg0, %c0_i32, %c0_i32_0 : i32, i32, i32
  }
  func.func @transform_3(%arg0: i32) -> (i32, i32, i32) {
    %c0_i32 = arith.constant 0 : i32
    %c0_i32_0 = arith.constant 0 : i32
    %c0_i32_1 = arith.constant 0 : i32
    return %arg0, %c0_i32, %c0_i32_0 : i32, i32, i32
  }
}

module attributes {stable_mosaic.version = 11 : i64} {
  func.func @_gat_head_kernel(%arg0: i32, %arg1: memref<32x128xf32, #tpu.memory_space<vmem>>, %arg2: memref<128x128xf32, #tpu.memory_space<vmem>>, %arg3: memref<32x128xi8, #tpu.memory_space<vmem>>, %arg4: memref<128x128xbf16, #tpu.memory_space<vmem>>, %arg5: memref<1x128xf32, #tpu.memory_space<vmem>>, %arg6: memref<1x128xf32, #tpu.memory_space<vmem>>, %arg7: memref<1x128xf32, #tpu.memory_space<vmem>>, %arg8: memref<1x1xf32, #tpu.memory_space<vmem>>, %arg9: memref<1x128xf32, #tpu.memory_space<vmem>>, %arg10: memref<32x128xf32, #tpu.memory_space<vmem>>) attributes {dimension_semantics = [#tpu.dimension_semantics<parallel>], iteration_bounds = array<i64: 1>, scalar_prefetch = 0 : i64, scratch_operands = 0 : i64, tpu.core_type = #tpu.core_type<tc>, window_params = [{transform_indices = @transform_0, window_bounds = array<i64: 32, 128>}, {pipeline_mode = #tpu.pipeline_mode<synchronous>, transform_indices = @transform_1, window_bounds = array<i64: 128, 128>}, {transform_indices = @transform_2, window_bounds = array<i64: 32, 128>}, {pipeline_mode = #tpu.pipeline_mode<synchronous>, transform_indices = @transform_3, window_bounds = array<i64: 128, 128>}, {pipeline_mode = #tpu.pipeline_mode<synchronous>, transform_indices = @transform_4, window_bounds = array<i64: 1, 128>}, {pipeline_mode = #tpu.pipeline_mode<synchronous>, transform_indices = @transform_5, window_bounds = array<i64: 1, 128>}, {pipeline_mode = #tpu.pipeline_mode<synchronous>, transform_indices = @transform_6, window_bounds = array<i64: 1, 128>}, {pipeline_mode = #tpu.pipeline_mode<synchronous>, transform_indices = @transform_7, window_bounds = array<i64: 1, 1>}, {pipeline_mode = #tpu.pipeline_mode<synchronous>, transform_indices = @transform_8, window_bounds = array<i64: 1, 128>}, {transform_indices = @transform_9, window_bounds = array<i64: 32, 128>}]} {
    %c0 = arith.constant 0 : index
    %c0_0 = arith.constant 0 : index
    %0 = vector.load %arg1[%c0, %c0_0] : memref<32x128xf32, #tpu.memory_space<vmem>>, vector<32x128xf32>
    %1 = arith.truncf %0 : vector<32x128xf32> to vector<32x128xbf16>
    %c0_1 = arith.constant 0 : index
    %c0_2 = arith.constant 0 : index
    %2 = vector.load %arg2[%c0_1, %c0_2] : memref<128x128xf32, #tpu.memory_space<vmem>>, vector<128x128xf32>
    %3 = arith.truncf %2 : vector<128x128xf32> to vector<128x128xbf16>
    %4 = tpu.concatenate %1, %3 in 0 : vector<32x128xbf16>, vector<128x128xbf16> -> vector<160x128xbf16>
    %c0_3 = arith.constant 0 : index
    %c0_4 = arith.constant 0 : index
    %5 = vector.load %arg4[%c0_3, %c0_4] : memref<128x128xbf16, #tpu.memory_space<vmem>>, vector<128x128xbf16>
    %cst = arith.constant dense<0.000000e+00> : vector<160x128xf32>
    %6 = tpu.matmul %4, %5, %cst {dimension_numbers = #tpu.dot_dimension_numbers<[1], [0], [0], [1], [0, 0, 1, 1], [], []>} : vector<160x128xbf16>, vector<128x128xbf16>, vector<160x128xf32> -> vector<160x128xf32>
    %c0_5 = arith.constant 0 : index
    %c0_6 = arith.constant 0 : index
    %7 = vector.load %arg5[%c0_5, %c0_6] : memref<1x128xf32, #tpu.memory_space<vmem>>, vector<1x128xf32>
    %8 = vector.broadcast %7 : vector<1x128xf32> to vector<160x128xf32>
    %9 = arith.addf %6, %8 : vector<160x128xf32>
    %10 = vector.extract_strided_slice %9 {offsets = [0, 0], sizes = [32, 128], strides = [1, 1]} : vector<160x128xf32> to vector<32x128xf32>
    %11 = vector.extract_strided_slice %9 {offsets = [32, 0], sizes = [128, 128], strides = [1, 1]} : vector<160x128xf32> to vector<128x128xf32>
    %c0_7 = arith.constant 0 : index
    %c0_8 = arith.constant 0 : index
    %12 = vector.load %arg6[%c0_7, %c0_8] : memref<1x128xf32, #tpu.memory_space<vmem>>, vector<1x128xf32>
    %13 = vector.broadcast %12 : vector<1x128xf32> to vector<32x128xf32>
    %14 = arith.mulf %10, %13 : vector<32x128xf32>
    %cst_9 = arith.constant dense<0.000000e+00> : vector<32xf32>
    %15 = vector.multi_reduction <add>, %14, %cst_9 [1] : vector<32x128xf32> to vector<32xf32>
    %16 = vector.shape_cast %15 : vector<32xf32> to vector<32x1xf32>
    %c0_10 = arith.constant 0 : index
    %c0_11 = arith.constant 0 : index
    %17 = vector.load %arg7[%c0_10, %c0_11] : memref<1x128xf32, #tpu.memory_space<vmem>>, vector<1x128xf32>
    %18 = vector.broadcast %17 : vector<1x128xf32> to vector<128x128xf32>
    %19 = arith.mulf %11, %18 : vector<128x128xf32>
    %cst_12 = arith.constant dense<0.000000e+00> : vector<128xf32>
    %20 = vector.multi_reduction <add>, %19, %cst_12 [1] : vector<128x128xf32> to vector<128xf32>
    %21 = vector.shape_cast %20 : vector<128xf32> to vector<128x1xf32>
    %22 = tpu.transpose %21, [1, 0] : vector<128x1xf32> -> vector<1x128xf32>
    %23 = vector.broadcast %16 : vector<32x1xf32> to vector<32x128xf32>
    %24 = vector.broadcast %22 : vector<1x128xf32> to vector<32x128xf32>
    %25 = arith.addf %23, %24 : vector<32x128xf32>
    %c0_13 = arith.constant 0 : index
    %c0_14 = arith.constant 0 : index
    %26 = vector.load %arg8[%c0_13, %c0_14] : memref<1x1xf32, #tpu.memory_space<vmem>>, vector<1x1xf32>
    %27 = vector.broadcast %26 : vector<1x1xf32> to vector<32x128xf32>
    %28 = arith.addf %25, %27 : vector<32x128xf32>
    %29 = math.tanh %28 : vector<32x128xf32>
    %c0_15 = arith.constant 0 : index
    %c0_16 = arith.constant 0 : index
    %30 = vector.load %arg3[%c0_15, %c0_16] : memref<32x128xi8, #tpu.memory_space<vmem>>, vector<32x128xi8>
    %c0_i8 = arith.constant 0 : i8
    %31 = vector.broadcast %c0_i8 : i8 to vector<32x128xi8>
    %32 = arith.cmpi ne, %30, %31 : vector<32x128xi8>
    %33 = math.exp %29 : vector<32x128xf32>
    %cst_17 = arith.constant 0.000000e+00 : f32
    %34 = vector.broadcast %cst_17 : f32 to vector<32x128xf32>
    %35 = arith.select %32, %33, %34 : vector<32x128xi1>, vector<32x128xf32>
    %cst_18 = arith.constant dense<0.000000e+00> : vector<32xf32>
    %36 = vector.multi_reduction <add>, %35, %cst_18 [1] : vector<32x128xf32> to vector<32xf32>
    %37 = vector.shape_cast %36 : vector<32xf32> to vector<32x1xf32>
    %cst_19 = arith.constant 0.000000e+00 : f32
    %38 = vector.broadcast %cst_19 : f32 to vector<32x1xf32>
    %39 = arith.cmpf ogt, %37, %38 : vector<32x1xf32>
    %cst_20 = arith.constant 1.000000e+00 : f32
    %40 = vector.broadcast %cst_20 : f32 to vector<32x1xf32>
    %41 = arith.select %39, %37, %40 : vector<32x1xi1>, vector<32x1xf32>
    %42 = tpu.reciprocal %41 {approx = true} : vector<32x1xf32> -> vector<32x1xf32>
    %43 = arith.truncf %35 : vector<32x128xf32> to vector<32x128xbf16>
    %44 = arith.truncf %11 : vector<128x128xf32> to vector<128x128xbf16>
    %cst_21 = arith.constant dense<0.000000e+00> : vector<32x128xf32>
    %45 = tpu.matmul %43, %44, %cst_21 {dimension_numbers = #tpu.dot_dimension_numbers<[1], [0], [0], [1], [0, 0, 1, 1], [], []>} : vector<32x128xbf16>, vector<128x128xbf16>, vector<32x128xf32> -> vector<32x128xf32>
    %46 = vector.broadcast %42 : vector<32x1xf32> to vector<32x128xf32>
    %47 = arith.mulf %45, %46 : vector<32x128xf32>
    %48 = arith.addf %0, %47 : vector<32x128xf32>
    %c0_22 = arith.constant 0 : index
    %c0_23 = arith.constant 0 : index
    %49 = vector.load %arg9[%c0_22, %c0_23] : memref<1x128xf32, #tpu.memory_space<vmem>>, vector<1x128xf32>
    %50 = vector.broadcast %49 : vector<1x128xf32> to vector<32x128xf32>
    %51 = arith.addf %48, %50 : vector<32x128xf32>
    %cst_24 = arith.constant 5.000000e-01 : f32
    %52 = vector.broadcast %cst_24 : f32 to vector<32x128xf32>
    %53 = arith.mulf %51, %52 : vector<32x128xf32>
    %c0_25 = arith.constant 0 : index
    %c0_26 = arith.constant 0 : index
    %54 = vector.load %arg10[%c0_25, %c0_26] : memref<32x128xf32, #tpu.memory_space<vmem>>, vector<32x128xf32>
    tpu.vector_store %arg10[%c0_25, %c0_26], %53 {strides = array<i32>} : memref<32x128xf32, #tpu.memory_space<vmem>>, vector<32x128xf32>,
    return
  }
  func.func @transform_0(%arg0: i32) -> (i32, i32) {
    %c0_i32 = arith.constant 0 : i32
    %c0_i32_0 = arith.constant 0 : i32
    return %arg0, %c0_i32 : i32, i32
  }
  func.func @transform_1(%arg0: i32) -> (i32, i32) {
    %c0_i32 = arith.constant 0 : i32
    %c0_i32_0 = arith.constant 0 : i32
    %c0_i32_1 = arith.constant 0 : i32
    return %c0_i32, %c0_i32_0 : i32, i32
  }
  func.func @transform_2(%arg0: i32) -> (i32, i32) {
    %c0_i32 = arith.constant 0 : i32
    %c0_i32_0 = arith.constant 0 : i32
    return %arg0, %c0_i32 : i32, i32
  }
  func.func @transform_3(%arg0: i32) -> (i32, i32) {
    %c0_i32 = arith.constant 0 : i32
    %c0_i32_0 = arith.constant 0 : i32
    %c0_i32_1 = arith.constant 0 : i32
    return %c0_i32, %c0_i32_0 : i32, i32
  }
  func.func @transform_4(%arg0: i32) -> (i32, i32) {
    %c0_i32 = arith.constant 0 : i32
    %c0_i32_0 = arith.constant 0 : i32
    %c0_i32_1 = arith.constant 0 : i32
    return %c0_i32, %c0_i32_0 : i32, i32
  }
  func.func @transform_5(%arg0: i32) -> (i32, i32) {
    %c0_i32 = arith.constant 0 : i32
    %c0_i32_0 = arith.constant 0 : i32
    %c0_i32_1 = arith.constant 0 : i32
    return %c0_i32, %c0_i32_0 : i32, i32
  }
  func.func @transform_6(%arg0: i32) -> (i32, i32) {
    %c0_i32 = arith.constant 0 : i32
    %c0_i32_0 = arith.constant 0 : i32
    %c0_i32_1 = arith.constant 0 : i32
    return %c0_i32, %c0_i32_0 : i32, i32
  }
  func.func @transform_7(%arg0: i32) -> (i32, i32) {
    %c0_i32 = arith.constant 0 : i32
    %c0_i32_0 = arith.constant 0 : i32
    %c0_i32_1 = arith.constant 0 : i32
    return %c0_i32, %c0_i32_0 : i32, i32
  }
  func.func @transform_8(%arg0: i32) -> (i32, i32) {
    %c0_i32 = arith.constant 0 : i32
    %c0_i32_0 = arith.constant 0 : i32
    %c0_i32_1 = arith.constant 0 : i32
    return %c0_i32, %c0_i32_0 : i32, i32
  }
  func.func @transform_9(%arg0: i32) -> (i32, i32) {
    %c0_i32 = arith.constant 0 : i32
    %c0_i32_0 = arith.constant 0 : i32
    return %arg0, %c0_i32 : i32, i32
  }
}

module attributes {stable_mosaic.version = 11 : i64} {
  func.func @_res_dnn_fused_kernel(%arg0: i32, %arg1: memref<8x128xf32, #tpu.memory_space<vmem>>, %arg2: memref<128x128xbf16, #tpu.memory_space<vmem>>, %arg3: memref<1x128xf32, #tpu.memory_space<vmem>>, %arg4: memref<4x128x128xbf16, #tpu.memory_space<vmem>>, %arg5: memref<4x1x128xf32, #tpu.memory_space<vmem>>, %arg6: memref<4x1x128xf32, #tpu.memory_space<vmem>>, %arg7: memref<4x1x128xf32, #tpu.memory_space<vmem>>, %arg8: memref<2x1x128xf32, #tpu.memory_space<vmem>>, %arg9: memref<2x1x128xf32, #tpu.memory_space<vmem>>, %arg10: memref<128x128xbf16, #tpu.memory_space<vmem>>, %arg11: memref<1x128xf32, #tpu.memory_space<vmem>>, %arg12: memref<8x128xf32, #tpu.memory_space<vmem>>) attributes {dimension_semantics = [#tpu.dimension_semantics<parallel>], iteration_bounds = array<i64: 1>, scalar_prefetch = 0 : i64, scratch_operands = 0 : i64, tpu.core_type = #tpu.core_type<tc>, window_params = [{transform_indices = @transform_0, window_bounds = array<i64: 8, 128>}, {pipeline_mode = #tpu.pipeline_mode<synchronous>, transform_indices = @transform_1, window_bounds = array<i64: 128, 128>}, {pipeline_mode = #tpu.pipeline_mode<synchronous>, transform_indices = @transform_2, window_bounds = array<i64: 1, 128>}, {pipeline_mode = #tpu.pipeline_mode<synchronous>, transform_indices = @transform_3, window_bounds = array<i64: 4, 128, 128>}, {pipeline_mode = #tpu.pipeline_mode<synchronous>, transform_indices = @transform_4, window_bounds = array<i64: 4, 1, 128>}, {pipeline_mode = #tpu.pipeline_mode<synchronous>, transform_indices = @transform_5, window_bounds = array<i64: 4, 1, 128>}, {pipeline_mode = #tpu.pipeline_mode<synchronous>, transform_indices = @transform_6, window_bounds = array<i64: 4, 1, 128>}, {pipeline_mode = #tpu.pipeline_mode<synchronous>, transform_indices = @transform_7, window_bounds = array<i64: 2, 1, 128>}, {pipeline_mode = #tpu.pipeline_mode<synchronous>, transform_indices = @transform_8, window_bounds = array<i64: 2, 1, 128>}, {pipeline_mode = #tpu.pipeline_mode<synchronous>, transform_indices = @transform_9, window_bounds = array<i64: 128, 128>}, {pipeline_mode = #tpu.pipeline_mode<synchronous>, transform_indices = @transform_10, window_bounds = array<i64: 1, 128>}, {transform_indices = @transform_11, window_bounds = array<i64: 8, 128>}]} {
    %c0 = arith.constant 0 : index
    %c0_0 = arith.constant 0 : index
    %0 = vector.load %arg1[%c0, %c0_0] : memref<8x128xf32, #tpu.memory_space<vmem>>, vector<8x128xf32>
    %c0_1 = arith.constant 0 : index
    %c0_2 = arith.constant 0 : index
    %1 = vector.load %arg2[%c0_1, %c0_2] : memref<128x128xbf16, #tpu.memory_space<vmem>>, vector<128x128xbf16>
    %c0_3 = arith.constant 0 : index
    %c0_4 = arith.constant 0 : index
    %2 = vector.load %arg3[%c0_3, %c0_4] : memref<1x128xf32, #tpu.memory_space<vmem>>, vector<1x128xf32>
    %3 = arith.truncf %0 : vector<8x128xf32> to vector<8x128xbf16>
    %cst = arith.constant dense<0.000000e+00> : vector<8x128xf32>
    %4 = tpu.matmul %3, %1, %cst {dimension_numbers = #tpu.dot_dimension_numbers<[1], [0], [0], [1], [0, 0, 1, 1], [], []>} : vector<8x128xbf16>, vector<128x128xbf16>, vector<8x128xf32> -> vector<8x128xf32>
    %5 = vector.broadcast %2 : vector<1x128xf32> to vector<8x128xf32>
    %6 = arith.addf %4, %5 : vector<8x128xf32>
    %c0_5 = arith.constant 0 : index
    %c0_6 = arith.constant 0 : index
    %c0_7 = arith.constant 0 : index
    %7 = vector.load %arg4[%c0_5, %c0_6, %c0_7] : memref<4x128x128xbf16, #tpu.memory_space<vmem>>, vector<1x128x128xbf16>
    %8 = vector.shape_cast %7 : vector<1x128x128xbf16> to vector<128x128xbf16>
    %c0_8 = arith.constant 0 : index
    %c0_9 = arith.constant 0 : index
    %c0_10 = arith.constant 0 : index
    %9 = vector.load %arg5[%c0_8, %c0_9, %c0_10] : memref<4x1x128xf32, #tpu.memory_space<vmem>>, vector<1x1x128xf32>
    %10 = vector.shape_cast %9 : vector<1x1x128xf32> to vector<1x128xf32>
    %11 = arith.truncf %6 : vector<8x128xf32> to vector<8x128xbf16>
    %cst_11 = arith.constant dense<0.000000e+00> : vector<8x128xf32>
    %12 = tpu.matmul %11, %8, %cst_11 {dimension_numbers = #tpu.dot_dimension_numbers<[1], [0], [0], [1], [0, 0, 1, 1], [], []>} : vector<8x128xbf16>, vector<128x128xbf16>, vector<8x128xf32> -> vector<8x128xf32>
    %13 = vector.broadcast %10 : vector<1x128xf32> to vector<8x128xf32>
    %14 = arith.addf %12, %13 : vector<8x128xf32>
    %15 = math.tanh %14 : vector<8x128xf32>
    %c0_12 = arith.constant 0 : index
    %c0_13 = arith.constant 0 : index
    %c0_14 = arith.constant 0 : index
    %16 = vector.load %arg6[%c0_12, %c0_13, %c0_14] : memref<4x1x128xf32, #tpu.memory_space<vmem>>, vector<1x1x128xf32>
    %17 = vector.shape_cast %16 : vector<1x1x128xf32> to vector<1x128xf32>
    %c0_15 = arith.constant 0 : index
    %c0_16 = arith.constant 0 : index
    %c0_17 = arith.constant 0 : index
    %18 = vector.load %arg7[%c0_15, %c0_16, %c0_17] : memref<4x1x128xf32, #tpu.memory_space<vmem>>, vector<1x1x128xf32>
    %19 = vector.shape_cast %18 : vector<1x1x128xf32> to vector<1x128xf32>
    %cst_18 = arith.constant dense<0.000000e+00> : vector<8xf32>
    %20 = vector.multi_reduction <add>, %15, %cst_18 [1] : vector<8x128xf32> to vector<8xf32>
    %21 = vector.shape_cast %20 : vector<8xf32> to vector<8x1xf32>
    %cst_19 = arith.constant 1.280000e+02 : f32
    %22 = vector.broadcast %cst_19 : f32 to vector<8x1xf32>
    %23 = arith.divf %21, %22 : vector<8x1xf32>
    %24 = vector.broadcast %23 : vector<8x1xf32> to vector<8x128xf32>
    %25 = arith.subf %15, %24 : vector<8x128xf32>
    %26 = arith.mulf %25, %25 : vector<8x128xf32>
    %cst_20 = arith.constant dense<0.000000e+00> : vector<8xf32>
    %27 = vector.multi_reduction <add>, %26, %cst_20 [1] : vector<8x128xf32> to vector<8xf32>
    %28 = vector.shape_cast %27 : vector<8xf32> to vector<8x1xf32>
    %cst_21 = arith.constant 1.280000e+02 : f32
    %29 = vector.broadcast %cst_21 : f32 to vector<8x1xf32>
    %30 = arith.divf %28, %29 : vector<8x1xf32>
    %31 = vector.broadcast %23 : vector<8x1xf32> to vector<8x128xf32>
    %32 = arith.subf %15, %31 : vector<8x128xf32>
    %cst_22 = arith.constant 9.99999974E-6 : f32
    %33 = vector.broadcast %cst_22 : f32 to vector<8x1xf32>
    %34 = arith.addf %30, %33 : vector<8x1xf32>
    %35 = math.rsqrt %34 : vector<8x1xf32>
    %36 = vector.broadcast %35 : vector<8x1xf32> to vector<8x128xf32>
    %37 = arith.mulf %32, %36 : vector<8x128xf32>
    %38 = vector.broadcast %17 : vector<1x128xf32> to vector<8x128xf32>
    %39 = arith.mulf %37, %38 : vector<8x128xf32>
    %40 = vector.broadcast %19 : vector<1x128xf32> to vector<8x128xf32>
    %41 = arith.addf %39, %40 : vector<8x128xf32>
    %c1 = arith.constant 1 : index
    %c0_23 = arith.constant 0 : index
    %c0_24 = arith.constant 0 : index
    %42 = vector.load %arg4[%c1, %c0_23, %c0_24] : memref<4x128x128xbf16, #tpu.memory_space<vmem>>, vector<1x128x128xbf16>
    %43 = vector.shape_cast %42 : vector<1x128x128xbf16> to vector<128x128xbf16>
    %c1_25 = arith.constant 1 : index
    %c0_26 = arith.constant 0 : index
    %c0_27 = arith.constant 0 : index
    %44 = vector.load %arg5[%c1_25, %c0_26, %c0_27] : memref<4x1x128xf32, #tpu.memory_space<vmem>>, vector<1x1x128xf32>
    %45 = vector.shape_cast %44 : vector<1x1x128xf32> to vector<1x128xf32>
    %46 = arith.truncf %41 : vector<8x128xf32> to vector<8x128xbf16>
    %cst_28 = arith.constant dense<0.000000e+00> : vector<8x128xf32>
    %47 = tpu.matmul %46, %43, %cst_28 {dimension_numbers = #tpu.dot_dimension_numbers<[1], [0], [0], [1], [0, 0, 1, 1], [], []>} : vector<8x128xbf16>, vector<128x128xbf16>, vector<8x128xf32> -> vector<8x128xf32>
    %48 = vector.broadcast %45 : vector<1x128xf32> to vector<8x128xf32>
    %49 = arith.addf %47, %48 : vector<8x128xf32>
    %50 = math.tanh %49 : vector<8x128xf32>
    %c1_29 = arith.constant 1 : index
    %c0_30 = arith.constant 0 : index
    %c0_31 = arith.constant 0 : index
    %51 = vector.load %arg6[%c1_29, %c0_30, %c0_31] : memref<4x1x128xf32, #tpu.memory_space<vmem>>, vector<1x1x128xf32>
    %52 = vector.shape_cast %51 : vector<1x1x128xf32> to vector<1x128xf32>
    %c1_32 = arith.constant 1 : index
    %c0_33 = arith.constant 0 : index
    %c0_34 = arith.constant 0 : index
    %53 = vector.load %arg7[%c1_32, %c0_33, %c0_34] : memref<4x1x128xf32, #tpu.memory_space<vmem>>, vector<1x1x128xf32>
    %54 = vector.shape_cast %53 : vector<1x1x128xf32> to vector<1x128xf32>
    %cst_35 = arith.constant dense<0.000000e+00> : vector<8xf32>
    %55 = vector.multi_reduction <add>, %50, %cst_35 [1] : vector<8x128xf32> to vector<8xf32>
    %56 = vector.shape_cast %55 : vector<8xf32> to vector<8x1xf32>
    %cst_36 = arith.constant 1.280000e+02 : f32
    %57 = vector.broadcast %cst_36 : f32 to vector<8x1xf32>
    %58 = arith.divf %56, %57 : vector<8x1xf32>
    %59 = vector.broadcast %58 : vector<8x1xf32> to vector<8x128xf32>
    %60 = arith.subf %50, %59 : vector<8x128xf32>
    %61 = arith.mulf %60, %60 : vector<8x128xf32>
    %cst_37 = arith.constant dense<0.000000e+00> : vector<8xf32>
    %62 = vector.multi_reduction <add>, %61, %cst_37 [1] : vector<8x128xf32> to vector<8xf32>
    %63 = vector.shape_cast %62 : vector<8xf32> to vector<8x1xf32>
    %cst_38 = arith.constant 1.280000e+02 : f32
    %64 = vector.broadcast %cst_38 : f32 to vector<8x1xf32>
    %65 = arith.divf %63, %64 : vector<8x1xf32>
    %66 = vector.broadcast %58 : vector<8x1xf32> to vector<8x128xf32>
    %67 = arith.subf %50, %66 : vector<8x128xf32>
    %cst_39 = arith.constant 9.99999974E-6 : f32
    %68 = vector.broadcast %cst_39 : f32 to vector<8x1xf32>
    %69 = arith.addf %65, %68 : vector<8x1xf32>
    %70 = math.rsqrt %69 : vector<8x1xf32>
    %71 = vector.broadcast %70 : vector<8x1xf32> to vector<8x128xf32>
    %72 = arith.mulf %67, %71 : vector<8x128xf32>
    %73 = vector.broadcast %52 : vector<1x128xf32> to vector<8x128xf32>
    %74 = arith.mulf %72, %73 : vector<8x128xf32>
    %75 = vector.broadcast %54 : vector<1x128xf32> to vector<8x128xf32>
    %76 = arith.addf %74, %75 : vector<8x128xf32>
    %77 = arith.addf %6, %76 : vector<8x128xf32>
    %78 = math.tanh %77 : vector<8x128xf32>
    %c0_40 = arith.constant 0 : index
    %c0_41 = arith.constant 0 : index
    %c0_42 = arith.constant 0 : index
    %79 = vector.load %arg8[%c0_40, %c0_41, %c0_42] : memref<2x1x128xf32, #tpu.memory_space<vmem>>, vector<1x1x128xf32>
    %80 = vector.shape_cast %79 : vector<1x1x128xf32> to vector<1x128xf32>
    %c0_43 = arith.constant 0 : index
    %c0_44 = arith.constant 0 : index
    %c0_45 = arith.constant 0 : index
    %81 = vector.load %arg9[%c0_43, %c0_44, %c0_45] : memref<2x1x128xf32, #tpu.memory_space<vmem>>, vector<1x1x128xf32>
    %82 = vector.shape_cast %81 : vector<1x1x128xf32> to vector<1x128xf32>
    %cst_46 = arith.constant dense<0.000000e+00> : vector<8xf32>
    %83 = vector.multi_reduction <add>, %78, %cst_46 [1] : vector<8x128xf32> to vector<8xf32>
    %84 = vector.shape_cast %83 : vector<8xf32> to vector<8x1xf32>
    %cst_47 = arith.constant 1.280000e+02 : f32
    %85 = vector.broadcast %cst_47 : f32 to vector<8x1xf32>
    %86 = arith.divf %84, %85 : vector<8x1xf32>
    %87 = vector.broadcast %86 : vector<8x1xf32> to vector<8x128xf32>
    %88 = arith.subf %78, %87 : vector<8x128xf32>
    %89 = arith.mulf %88, %88 : vector<8x128xf32>
    %cst_48 = arith.constant dense<0.000000e+00> : vector<8xf32>
    %90 = vector.multi_reduction <add>, %89, %cst_48 [1] : vector<8x128xf32> to vector<8xf32>
    %91 = vector.shape_cast %90 : vector<8xf32> to vector<8x1xf32>
    %cst_49 = arith.constant 1.280000e+02 : f32
    %92 = vector.broadcast %cst_49 : f32 to vector<8x1xf32>
    %93 = arith.divf %91, %92 : vector<8x1xf32>
    %94 = vector.broadcast %86 : vector<8x1xf32> to vector<8x128xf32>
    %95 = arith.subf %78, %94 : vector<8x128xf32>
    %cst_50 = arith.constant 9.99999974E-6 : f32
    %96 = vector.broadcast %cst_50 : f32 to vector<8x1xf32>
    %97 = arith.addf %93, %96 : vector<8x1xf32>
    %98 = math.rsqrt %97 : vector<8x1xf32>
    %99 = vector.broadcast %98 : vector<8x1xf32> to vector<8x128xf32>
    %100 = arith.mulf %95, %99 : vector<8x128xf32>
    %101 = vector.broadcast %80 : vector<1x128xf32> to vector<8x128xf32>
    %102 = arith.mulf %100, %101 : vector<8x128xf32>
    %103 = vector.broadcast %82 : vector<1x128xf32> to vector<8x128xf32>
    %104 = arith.addf %102, %103 : vector<8x128xf32>
    %c2 = arith.constant 2 : index
    %c0_51 = arith.constant 0 : index
    %c0_52 = arith.constant 0 : index
    %105 = vector.load %arg4[%c2, %c0_51, %c0_52] : memref<4x128x128xbf16, #tpu.memory_space<vmem>>, vector<1x128x128xbf16>
    %106 = vector.shape_cast %105 : vector<1x128x128xbf16> to vector<128x128xbf16>
    %c2_53 = arith.constant 2 : index
    %c0_54 = arith.constant 0 : index
    %c0_55 = arith.constant 0 : index
    %107 = vector.load %arg5[%c2_53, %c0_54, %c0_55] : memref<4x1x128xf32, #tpu.memory_space<vmem>>, vector<1x1x128xf32>
    %108 = vector.shape_cast %107 : vector<1x1x128xf32> to vector<1x128xf32>
    %109 = arith.truncf %104 : vector<8x128xf32> to vector<8x128xbf16>
    %cst_56 = arith.constant dense<0.000000e+00> : vector<8x128xf32>
    %110 = tpu.matmul %109, %106, %cst_56 {dimension_numbers = #tpu.dot_dimension_numbers<[1], [0], [0], [1], [0, 0, 1, 1], [], []>} : vector<8x128xbf16>, vector<128x128xbf16>, vector<8x128xf32> -> vector<8x128xf32>
    %111 = vector.broadcast %108 : vector<1x128xf32> to vector<8x128xf32>
    %112 = arith.addf %110, %111 : vector<8x128xf32>
    %113 = math.tanh %112 : vector<8x128xf32>
    %c2_57 = arith.constant 2 : index
    %c0_58 = arith.constant 0 : index
    %c0_59 = arith.constant 0 : index
    %114 = vector.load %arg6[%c2_57, %c0_58, %c0_59] : memref<4x1x128xf32, #tpu.memory_space<vmem>>, vector<1x1x128xf32>
    %115 = vector.shape_cast %114 : vector<1x1x128xf32> to vector<1x128xf32>
    %c2_60 = arith.constant 2 : index
    %c0_61 = arith.constant 0 : index
    %c0_62 = arith.constant 0 : index
    %116 = vector.load %arg7[%c2_60, %c0_61, %c0_62] : memref<4x1x128xf32, #tpu.memory_space<vmem>>, vector<1x1x128xf32>
    %117 = vector.shape_cast %116 : vector<1x1x128xf32> to vector<1x128xf32>
    %cst_63 = arith.constant dense<0.000000e+00> : vector<8xf32>
    %118 = vector.multi_reduction <add>, %113, %cst_63 [1] : vector<8x128xf32> to vector<8xf32>
    %119 = vector.shape_cast %118 : vector<8xf32> to vector<8x1xf32>
    %cst_64 = arith.constant 1.280000e+02 : f32
    %120 = vector.broadcast %cst_64 : f32 to vector<8x1xf32>
    %121 = arith.divf %119, %120 : vector<8x1xf32>
    %122 = vector.broadcast %121 : vector<8x1xf32> to vector<8x128xf32>
    %123 = arith.subf %113, %122 : vector<8x128xf32>
    %124 = arith.mulf %123, %123 : vector<8x128xf32>
    %cst_65 = arith.constant dense<0.000000e+00> : vector<8xf32>
    %125 = vector.multi_reduction <add>, %124, %cst_65 [1] : vector<8x128xf32> to vector<8xf32>
    %126 = vector.shape_cast %125 : vector<8xf32> to vector<8x1xf32>
    %cst_66 = arith.constant 1.280000e+02 : f32
    %127 = vector.broadcast %cst_66 : f32 to vector<8x1xf32>
    %128 = arith.divf %126, %127 : vector<8x1xf32>
    %129 = vector.broadcast %121 : vector<8x1xf32> to vector<8x128xf32>
    %130 = arith.subf %113, %129 : vector<8x128xf32>
    %cst_67 = arith.constant 9.99999974E-6 : f32
    %131 = vector.broadcast %cst_67 : f32 to vector<8x1xf32>
    %132 = arith.addf %128, %131 : vector<8x1xf32>
    %133 = math.rsqrt %132 : vector<8x1xf32>
    %134 = vector.broadcast %133 : vector<8x1xf32> to vector<8x128xf32>
    %135 = arith.mulf %130, %134 : vector<8x128xf32>
    %136 = vector.broadcast %115 : vector<1x128xf32> to vector<8x128xf32>
    %137 = arith.mulf %135, %136 : vector<8x128xf32>
    %138 = vector.broadcast %117 : vector<1x128xf32> to vector<8x128xf32>
    %139 = arith.addf %137, %138 : vector<8x128xf32>
    %c3 = arith.constant 3 : index
    %c0_68 = arith.constant 0 : index
    %c0_69 = arith.constant 0 : index
    %140 = vector.load %arg4[%c3, %c0_68, %c0_69] : memref<4x128x128xbf16, #tpu.memory_space<vmem>>, vector<1x128x128xbf16>
    %141 = vector.shape_cast %140 : vector<1x128x128xbf16> to vector<128x128xbf16>
    %c3_70 = arith.constant 3 : index
    %c0_71 = arith.constant 0 : index
    %c0_72 = arith.constant 0 : index
    %142 = vector.load %arg5[%c3_70, %c0_71, %c0_72] : memref<4x1x128xf32, #tpu.memory_space<vmem>>, vector<1x1x128xf32>
    %143 = vector.shape_cast %142 : vector<1x1x128xf32> to vector<1x128xf32>
    %144 = arith.truncf %139 : vector<8x128xf32> to vector<8x128xbf16>
    %cst_73 = arith.constant dense<0.000000e+00> : vector<8x128xf32>
    %145 = tpu.matmul %144, %141, %cst_73 {dimension_numbers = #tpu.dot_dimension_numbers<[1], [0], [0], [1], [0, 0, 1, 1], [], []>} : vector<8x128xbf16>, vector<128x128xbf16>, vector<8x128xf32> -> vector<8x128xf32>
    %146 = vector.broadcast %143 : vector<1x128xf32> to vector<8x128xf32>
    %147 = arith.addf %145, %146 : vector<8x128xf32>
    %148 = math.tanh %147 : vector<8x128xf32>
    %c3_74 = arith.constant 3 : index
    %c0_75 = arith.constant 0 : index
    %c0_76 = arith.constant 0 : index
    %149 = vector.load %arg6[%c3_74, %c0_75, %c0_76] : memref<4x1x128xf32, #tpu.memory_space<vmem>>, vector<1x1x128xf32>
    %150 = vector.shape_cast %149 : vector<1x1x128xf32> to vector<1x128xf32>
    %c3_77 = arith.constant 3 : index
    %c0_78 = arith.constant 0 : index
    %c0_79 = arith.constant 0 : index
    %151 = vector.load %arg7[%c3_77, %c0_78, %c0_79] : memref<4x1x128xf32, #tpu.memory_space<vmem>>, vector<1x1x128xf32>
    %152 = vector.shape_cast %151 : vector<1x1x128xf32> to vector<1x128xf32>
    %cst_80 = arith.constant dense<0.000000e+00> : vector<8xf32>
    %153 = vector.multi_reduction <add>, %148, %cst_80 [1] : vector<8x128xf32> to vector<8xf32>
    %154 = vector.shape_cast %153 : vector<8xf32> to vector<8x1xf32>
    %cst_81 = arith.constant 1.280000e+02 : f32
    %155 = vector.broadcast %cst_81 : f32 to vector<8x1xf32>
    %156 = arith.divf %154, %155 : vector<8x1xf32>
    %157 = vector.broadcast %156 : vector<8x1xf32> to vector<8x128xf32>
    %158 = arith.subf %148, %157 : vector<8x128xf32>
    %159 = arith.mulf %158, %158 : vector<8x128xf32>
    %cst_82 = arith.constant dense<0.000000e+00> : vector<8xf32>
    %160 = vector.multi_reduction <add>, %159, %cst_82 [1] : vector<8x128xf32> to vector<8xf32>
    %161 = vector.shape_cast %160 : vector<8xf32> to vector<8x1xf32>
    %cst_83 = arith.constant 1.280000e+02 : f32
    %162 = vector.broadcast %cst_83 : f32 to vector<8x1xf32>
    %163 = arith.divf %161, %162 : vector<8x1xf32>
    %164 = vector.broadcast %156 : vector<8x1xf32> to vector<8x128xf32>
    %165 = arith.subf %148, %164 : vector<8x128xf32>
    %cst_84 = arith.constant 9.99999974E-6 : f32
    %166 = vector.broadcast %cst_84 : f32 to vector<8x1xf32>
    %167 = arith.addf %163, %166 : vector<8x1xf32>
    %168 = math.rsqrt %167 : vector<8x1xf32>
    %169 = vector.broadcast %168 : vector<8x1xf32> to vector<8x128xf32>
    %170 = arith.mulf %165, %169 : vector<8x128xf32>
    %171 = vector.broadcast %150 : vector<1x128xf32> to vector<8x128xf32>
    %172 = arith.mulf %170, %171 : vector<8x128xf32>
    %173 = vector.broadcast %152 : vector<1x128xf32> to vector<8x128xf32>
    %174 = arith.addf %172, %173 : vector<8x128xf32>
    %175 = arith.addf %104, %174 : vector<8x128xf32>
    %176 = math.tanh %175 : vector<8x128xf32>
    %c1_85 = arith.constant 1 : index
    %c0_86 = arith.constant 0 : index
    %c0_87 = arith.constant 0 : index
    %177 = vector.load %arg8[%c1_85, %c0_86, %c0_87] : memref<2x1x128xf32, #tpu.memory_space<vmem>>, vector<1x1x128xf32>
    %178 = vector.shape_cast %177 : vector<1x1x128xf32> to vector<1x128xf32>
    %c1_88 = arith.constant 1 : index
    %c0_89 = arith.constant 0 : index
    %c0_90 = arith.constant 0 : index
    %179 = vector.load %arg9[%c1_88, %c0_89, %c0_90] : memref<2x1x128xf32, #tpu.memory_space<vmem>>, vector<1x1x128xf32>
    %180 = vector.shape_cast %179 : vector<1x1x128xf32> to vector<1x128xf32>
    %cst_91 = arith.constant dense<0.000000e+00> : vector<8xf32>
    %181 = vector.multi_reduction <add>, %176, %cst_91 [1] : vector<8x128xf32> to vector<8xf32>
    %182 = vector.shape_cast %181 : vector<8xf32> to vector<8x1xf32>
    %cst_92 = arith.constant 1.280000e+02 : f32
    %183 = vector.broadcast %cst_92 : f32 to vector<8x1xf32>
    %184 = arith.divf %182, %183 : vector<8x1xf32>
    %185 = vector.broadcast %184 : vector<8x1xf32> to vector<8x128xf32>
    %186 = arith.subf %176, %185 : vector<8x128xf32>
    %187 = arith.mulf %186, %186 : vector<8x128xf32>
    %cst_93 = arith.constant dense<0.000000e+00> : vector<8xf32>
    %188 = vector.multi_reduction <add>, %187, %cst_93 [1] : vector<8x128xf32> to vector<8xf32>
    %189 = vector.shape_cast %188 : vector<8xf32> to vector<8x1xf32>
    %cst_94 = arith.constant 1.280000e+02 : f32
    %190 = vector.broadcast %cst_94 : f32 to vector<8x1xf32>
    %191 = arith.divf %189, %190 : vector<8x1xf32>
    %192 = vector.broadcast %184 : vector<8x1xf32> to vector<8x128xf32>
    %193 = arith.subf %176, %192 : vector<8x128xf32>
    %cst_95 = arith.constant 9.99999974E-6 : f32
    %194 = vector.broadcast %cst_95 : f32 to vector<8x1xf32>
    %195 = arith.addf %191, %194 : vector<8x1xf32>
    %196 = math.rsqrt %195 : vector<8x1xf32>
    %197 = vector.broadcast %196 : vector<8x1xf32> to vector<8x128xf32>
    %198 = arith.mulf %193, %197 : vector<8x128xf32>
    %199 = vector.broadcast %178 : vector<1x128xf32> to vector<8x128xf32>
    %200 = arith.mulf %198, %199 : vector<8x128xf32>
    %201 = vector.broadcast %180 : vector<1x128xf32> to vector<8x128xf32>
    %202 = arith.addf %200, %201 : vector<8x128xf32>
    %c0_96 = arith.constant 0 : index
    %c0_97 = arith.constant 0 : index
    %203 = vector.load %arg10[%c0_96, %c0_97] : memref<128x128xbf16, #tpu.memory_space<vmem>>, vector<128x128xbf16>
    %c0_98 = arith.constant 0 : index
    %c0_99 = arith.constant 0 : index
    %204 = vector.load %arg11[%c0_98, %c0_99] : memref<1x128xf32, #tpu.memory_space<vmem>>, vector<1x128xf32>
    %205 = arith.truncf %202 : vector<8x128xf32> to vector<8x128xbf16>
    %cst_100 = arith.constant dense<0.000000e+00> : vector<8x128xf32>
    %206 = tpu.matmul %205, %203, %cst_100 {dimension_numbers = #tpu.dot_dimension_numbers<[1], [0], [0], [1], [0, 0, 1, 1], [], []>} : vector<8x128xbf16>, vector<128x128xbf16>, vector<8x128xf32> -> vector<8x128xf32>
    %207 = vector.broadcast %204 : vector<1x128xf32> to vector<8x128xf32>
    %208 = arith.addf %206, %207 : vector<8x128xf32>
    %209 = arith.negf %208 : vector<8x128xf32>
    %210 = math.exp %209 : vector<8x128xf32>
    %cst_101 = arith.constant 1.000000e+00 : f32
    %211 = vector.broadcast %cst_101 : f32 to vector<8x128xf32>
    %212 = arith.addf %211, %210 : vector<8x128xf32>
    %213 = arith.divf %211, %212 : vector<8x128xf32>
    %c0_102 = arith.constant 0 : index
    %c0_103 = arith.constant 0 : index
    %214 = vector.load %arg12[%c0_102, %c0_103] : memref<8x128xf32, #tpu.memory_space<vmem>>, vector<8x128xf32>
    tpu.vector_store %arg12[%c0_102, %c0_103], %213 {strides = array<i32>} : memref<8x128xf32, #tpu.memory_space<vmem>>, vector<8x128xf32>,
    return
  }
  func.func @transform_0(%arg0: i32) -> (i32, i32) {
    %c0_i32 = arith.constant 0 : i32
    %c0_i32_0 = arith.constant 0 : i32
    return %arg0, %c0_i32 : i32, i32
  }
  func.func @transform_1(%arg0: i32) -> (i32, i32) {
    %c0_i32 = arith.constant 0 : i32
    %c0_i32_0 = arith.constant 0 : i32
    %c0_i32_1 = arith.constant 0 : i32
    return %c0_i32, %c0_i32_0 : i32, i32
  }
  func.func @transform_2(%arg0: i32) -> (i32, i32) {
    %c0_i32 = arith.constant 0 : i32
    %c0_i32_0 = arith.constant 0 : i32
    %c0_i32_1 = arith.constant 0 : i32
    return %c0_i32, %c0_i32_0 : i32, i32
  }
  func.func @transform_3(%arg0: i32) -> (i32, i32, i32) {
    %c0_i32 = arith.constant 0 : i32
    %c0_i32_0 = arith.constant 0 : i32
    %c0_i32_1 = arith.constant 0 : i32
    %c0_i32_2 = arith.constant 0 : i32
    return %c0_i32, %c0_i32_0, %c0_i32_1 : i32, i32, i32
  }
  func.func @transform_4(%arg0: i32) -> (i32, i32, i32) {
    %c0_i32 = arith.constant 0 : i32
    %c0_i32_0 = arith.constant 0 : i32
    %c0_i32_1 = arith.constant 0 : i32
    %c0_i32_2 = arith.constant 0 : i32
    return %c0_i32, %c0_i32_0, %c0_i32_1 : i32, i32, i32
  }
  func.func @transform_5(%arg0: i32) -> (i32, i32, i32) {
    %c0_i32 = arith.constant 0 : i32
    %c0_i32_0 = arith.constant 0 : i32
    %c0_i32_1 = arith.constant 0 : i32
    %c0_i32_2 = arith.constant 0 : i32
    return %c0_i32, %c0_i32_0, %c0_i32_1 : i32, i32, i32
  }
  func.func @transform_6(%arg0: i32) -> (i32, i32, i32) {
    %c0_i32 = arith.constant 0 : i32
    %c0_i32_0 = arith.constant 0 : i32
    %c0_i32_1 = arith.constant 0 : i32
    %c0_i32_2 = arith.constant 0 : i32
    return %c0_i32, %c0_i32_0, %c0_i32_1 : i32, i32, i32
  }
  func.func @transform_7(%arg0: i32) -> (i32, i32, i32) {
    %c0_i32 = arith.constant 0 : i32
    %c0_i32_0 = arith.constant 0 : i32
    %c0_i32_1 = arith.constant 0 : i32
    %c0_i32_2 = arith.constant 0 : i32
    return %c0_i32, %c0_i32_0, %c0_i32_1 : i32, i32, i32
  }
  func.func @transform_8(%arg0: i32) -> (i32, i32, i32) {
    %c0_i32 = arith.constant 0 : i32
    %c0_i32_0 = arith.constant 0 : i32
    %c0_i32_1 = arith.constant 0 : i32
    %c0_i32_2 = arith.constant 0 : i32
    return %c0_i32, %c0_i32_0, %c0_i32_1 : i32, i32, i32
  }
  func.func @transform_9(%arg0: i32) -> (i32, i32) {
    %c0_i32 = arith.constant 0 : i32
    %c0_i32_0 = arith.constant 0 : i32
    %c0_i32_1 = arith.constant 0 : i32
    return %c0_i32, %c0_i32_0 : i32, i32
  }
  func.func @transform_10(%arg0: i32) -> (i32, i32) {
    %c0_i32 = arith.constant 0 : i32
    %c0_i32_0 = arith.constant 0 : i32
    %c0_i32_1 = arith.constant 0 : i32
    return %c0_i32, %c0_i32_0 : i32, i32
  }
  func.func @transform_11(%arg0: i32) -> (i32, i32) {
    %c0_i32 = arith.constant 0 : i32
    %c0_i32_0 = arith.constant 0 : i32
    return %arg0, %c0_i32 : i32, i32
  }
}

</mosaic_0001>

<bundles_post_ra>
// kernel: forward.5
= control target key start
LH: loop header
LB: loop body
LE: loop exit
PB: predicated region body
PF: predicated region fallthrough
CT: control target
= control target key end

     0   :  { %s415_s12 = smov 0   ;;  %s438_s0 = inlined_call_operand.vmem [shape: f32[2,16,16], index: 0, kind: input, shape index: {}]   ;;  %s439_s1 = inlined_call_operand.vmem [shape: bf16[2,16,128], index: 1, kind: input, shape index: {}]   ;;  %s440_s2 = inlined_call_operand.vmem [shape: f32[2,1,128], index: 2, kind: input, shape index: {}]   ;;  %s441_s3 = inlined_call_operand.vmem [shape: f32[2,16,128], index: 3, kind: output, shape index: {}]  }
   0x1 LB: > { %s347_s13 = sadd.s32 4294967295, %s391_s12   ;;  %p351_p0 = scmp.ge.s32.totalorder %s391_s12, 1  ;;  %s391_s12 = sphi %s415_s12, %s13_s12  }
   0x2   : > { %p155_p1 = scmp.lt.s32.totalorder %s391_s12, 3 }
   0x4   : > { %p156_p2 = pnand %p351_p0, %p155_p1 }
   0x5   : > { %p187_p3 = scmp.lt.s32.totalorder (!%p156_p2), %s347_s13, 1  ;;  %v393_v0 = vmov (!%p156_p2), 0.0   ;;  %vm394_vm0 = vmmov (!%p156_p2), 0   ;;  %vm224_vm1 = vcmask (!%p156_p2), 130048  }
   0x6   : > { %159 = sbr.rel (%p156_p2) target bundleno = 237 (0xed), region = 32  ;;  %368 = vmatprep.subr.bf16.mxu0 (!%p156_p2), %v393_v0  ;;  %370 = vmatprep.mubr.msk.bf16.mxu0 (!%p156_p2), %vm394_vm0, %v393_v0 }
   0xd   : > { %s443_s13 = smov (!%p187_p3, %s347_s13), 1 }
   0xe   : > { %s364_s14 = sshll.u32 %s443_s13, 3  ;;  %s363_s15 = sshll.u32 %s443_s13, 4 }
   0xf   : > { %s196_s18 = scalar_lea.vmem %s439_s1, %s364_s14  ;;  %s191_s21 = scalar_lea.vmem %s438_s0, %s363_s15 }
  0x10   : > { %v384_v1 = vld [vmem:[%s196_s18] sm:$0xff]   ;;  %v207_v3 = vld [vmem:[%s191_s21 + $0x8] sm:$0xff]  ;;  %s199_s24 = scalar_lea.vmem %s440_s2, %s443_s13  ;;  %s204_s27 = scalar_lea.vmem %s441_s3, %s363_s15 }
  0x11   : > { %v206_v2 = vld [vmem:[%s191_s21] sm:$0xff]  ;;  %369 = vmatpush3.bf16.msra.mxu0 %v384_v1 }
  0x12   : > { %v208_v4 = vpack.c.bf16 %v207_v3, %v206_v2  ;;  %v358_v5 = vld [vmem:[%s199_s24] ss:$0 sm:$0xff] }
  0x14   : > { %371 = vmatmul.mubr.msk.bf16.vlgmr.msra.gmra.mrb[0].mxu0 %vm224_vm1, %v208_v4 }
  0xe7   : > { %v262_v6 = vpop.f32.mrb[0].mxu0 }
  0xe8   : > { %v263_v7 = vadd.f32 %v358_v5, %v262_v6  ;;  %v372_v8 = vpop.f32.mrb[1].mxu0 }
  0xe9   : > { %v265_v9 = vpop.f32.mrb[2].mxu0 }
  0xea   : > { %269 = vst [vmem:[%s204_s27] sm:$0xff] %v263_v7  ;;  %v266_v10 = vadd.f32 %v358_v5, %v265_v9  ;;  %v373_v11 = vpop.f32.mrb[3].mxu0 }
  0xec   : > { %270 = vst [vmem:[%s204_s27 + $0x8] sm:$0xff] %v266_v10 }
  0xed PF: > { %s13_s12 = sadd.s32 1, %s391_s12  }
  0xee   : > { %p10_p4 = scmp.ge.s32.totalorder %s13_s12, 4  }
  0xf0   :  { %12 = sbr.rel (!%p10_p4) target bundleno = 1 (0x1), region = 68 }

// kernel: forward.7
= control target key start
LH: loop header
LB: loop body
LE: loop exit
PB: predicated region body
PF: predicated region fallthrough
CT: control target
= control target key end

     0   :  { %s925_s3 = inlined_call_operand.vmem [shape: bf16[128,128], index: 3, kind: input, shape index: {}]   ;;  %s926_s0 = inlined_call_operand.vmem [shape: f32[32,128], index: 0, kind: input, shape index: {}]   ;;  %s927_s1 = inlined_call_operand.vmem [shape: f32[128,128], index: 1, kind: input, shape index: {}]   ;;  %s928_s4 = inlined_call_operand.vmem [shape: f32[1,128], index: 4, kind: input, shape index: {}]   ;;  %s929_s6 = inlined_call_operand.vmem [shape: f32[1,128], index: 6, kind: input, shape index: {}]   ;;  %s930_s7 = inlined_call_operand.<no memory space> [shape: f32[1,1], index: 7, kind: input, shape index: {}]   ;;  %s931_s5 = inlined_call_operand.vmem [shape: f32[1,128], index: 5, kind: input, shape index: {}]   ;;  %s932_s2 = inlined_call_operand.vmem [shape: s8[32,128], index: 2, kind: input, shape index: {}]   ;;  %s933_s8 = inlined_call_operand.vmem [shape: f32[1,128], index: 8, kind: input, shape index: {}]   ;;  %s934_s9 = inlined_call_operand.vmem [shape: f32[32,128], index: 9, kind: output, shape index: {}]  }
   0x1   :  { %v630_v0 = vld [vmem:[%s925_s3] sm:$0xff]   ;;  %v631_v1 = vld [vmem:[%s925_s3 + $0x8] sm:$0xff]   ;;  %v632_v2 = vld [vmem:[%s925_s3 + $0x10] sm:$0xff]  }
   0x2   :  { %572 = vmatprep.subr.bf16.mxu0 %v630_v0  ;;  %v633_v3 = vld [vmem:[%s925_s3 + $0x18] sm:$0xff]   ;;  %v728_v4 = vld [vmem:[%s926_s0] sm:$0xff]  ;;  %v733_v5 = vld [vmem:[%s926_s0 + $0x8] sm:$0xff] }
   0x3   :  { %573 = vmatpush3.bf16.msra.mxu0 %v630_v0  ;;  %v41_v6 = vpack.c.bf16 %v733_v5, %v728_v4  ;;  %v634_v7 = vld [vmem:[%s925_s3 + $0x20] sm:$0xff]   ;;  %v635_v8 = vld [vmem:[%s925_s3 + $0x28] sm:$0xff]   ;;  %v636_v9 = vld [vmem:[%s925_s3 + $0x30] sm:$0xff]  }
   0x4   :  { %574 = vmatprep.subr.bf16.mxu0 %v631_v1  ;;  %v637_v10 = vld [vmem:[%s925_s3 + $0x38] sm:$0xff]   ;;  %v752_v11 = vld [vmem:[%s926_s0 + $0x10] sm:$0xff]  ;;  %v43_v13 = vld [vmem:[%s927_s1] sm:$0xff] }
   0x5   :  { %588 = vmatprep.mubr.bf16.mxu0 %v41_v6  ;;  %v757_v12 = vld [vmem:[%s926_s0 + $0x18] sm:$0xff]  ;;  %v44_v14 = vld [vmem:[%s927_s1 + $0x8] sm:$0xff]  ;;  %v45_v17 = vld [vmem:[%s927_s1 + $0x10] sm:$0xff] }
   0x6   :  { %v42_v15 = vpack.c.bf16 %v757_v12, %v752_v11  ;;  %v59_v16 = vpack.c.bf16 %v44_v14, %v43_v13  ;;  %v46_v18 = vld [vmem:[%s927_s1 + $0x18] sm:$0xff]  ;;  %v47_v19 = vld [vmem:[%s927_s1 + $0x20] sm:$0xff]  ;;  %v48_v20 = vld [vmem:[%s927_s1 + $0x28] sm:$0xff]  ;;  %v14_v13 = vstv %s930_s7 }
   0x7   :  { %575 = vmatpush3.bf16.msra.mxu0 %v631_v1  ;;  %v60_v21 = vpack.c.bf16 %v46_v18, %v45_v17  ;;  %v61_v22 = vpack.c.bf16 %v48_v20, %v47_v19  ;;  %v49_v23 = vld [vmem:[%s927_s1 + $0x30] sm:$0xff]  ;;  %v50_v24 = vld [vmem:[%s927_s1 + $0x38] sm:$0xff]  ;;  %v51_v25 = vld [vmem:[%s927_s1 + $0x40] sm:$0xff]  ;;  %15 = vst [vmem:[#allocation2] sm:$0x1] %v14_v13 }
   0x8   :  { %576 = vmatprep.subr.bf16.mxu0 %v632_v2  ;;  %v52_v26 = vld [vmem:[%s927_s1 + $0x48] sm:$0xff]  ;;  %v62_v27 = vpack.c.bf16 %v50_v24, %v49_v23  ;;  %v53_v29 = vld [vmem:[%s927_s1 + $0x50] sm:$0xff]  ;;  %v54_v30 = vld [vmem:[%s927_s1 + $0x58] sm:$0xff] }
   0x9   :  { %v63_v28 = vpack.c.bf16 %v52_v26, %v51_v25  ;;  %v55_v31 = vld [vmem:[%s927_s1 + $0x60] sm:$0xff]  ;;  %v56_v32 = vld [vmem:[%s927_s1 + $0x68] sm:$0xff]  ;;  %v64_v33 = vpack.c.bf16 %v54_v30, %v53_v29  ;;  %v57_v35 = vld [vmem:[%s927_s1 + $0x70] sm:$0xff] }
   0xa   :  { %v65_v34 = vpack.c.bf16 %v56_v32, %v55_v31  ;;  %v58_v36 = vld [vmem:[%s927_s1 + $0x78] sm:$0xff]  ;;  %v820_v42 = vld [vmem:[%s928_s4] ss:$0 sm:$0xff] }
   0xb   :  { %577 = vmatpush3.bf16.msra.mxu0 %v632_v2  ;;  %v66_v37 = vpack.c.bf16 %v58_v36, %v57_v35  ;;  %v825_v44 = vld [vmem:[%s929_s6] ss:$0 sm:$0xff] }
   0xc   :  { %578 = vmatprep.subr.bf16.mxu0 %v633_v3 }
   0xf   :  { %579 = vmatpush3.bf16.msra.mxu0 %v633_v3 }
  0x10   :  { %580 = vmatprep.subr.bf16.mxu0 %v634_v7 }
  0x13   :  { %581 = vmatpush3.bf16.msra.mxu0 %v634_v7 }
  0x14   :  { %582 = vmatprep.subr.bf16.mxu0 %v635_v8 }
  0x17   :  { %583 = vmatpush3.bf16.msra.mxu0 %v635_v8 }
  0x18   :  { %584 = vmatprep.subr.bf16.mxu0 %v636_v9 }
  0x1b   :  { %585 = vmatpush3.bf16.msra.mxu0 %v636_v9 }
  0x1c   :  { %586 = vmatprep.subr.bf16.mxu0 %v637_v10 }
  0x1f   :  { %587 = vmatpush3.bf16.msra.mxu0 %v637_v10 }
  0x22   :  { %589 = vmatmul.mubr.bf16.vlgmr.msra.gmra.mrb[0].mxu0 %v42_v15 }
  0x23   :  { %592 = vmatprep.mubr.bf16.mxu0 %v59_v16 }
  0x2a   :  { %593 = vmatmul.mubr.bf16.gmra.mrb[4].mxu0 %v60_v21 }
  0x2b   :  { %596 = vmatprep.mubr.bf16.mxu0 %v61_v22 }
  0x32   :  { %597 = vmatmul.mubr.bf16.gmra.mrb[8].mxu0 %v62_v27 }
  0x33   :  { %600 = vmatprep.mubr.bf16.mxu0 %v63_v28  ;;  %v662_v28 = vmov 0  }
  0x34   :  { %629 = vset.pattern.permute.xlu0 %v662_v28 }
  0x3a   :  { %601 = vmatmul.mubr.bf16.gmra.mrb[12].mxu0 %v64_v33 }
  0x3b   :  { %604 = vmatprep.mubr.bf16.mxu0 %v65_v34 }
  0x42   :  { %605 = vmatmul.mubr.bf16.gmra.mrb[16].mxu0 %v66_v37  ;;  %v534_v37 = vld [vmem:[%s931_s5] ss:$0 sm:$0xff] }
  0xf5   :  { %v809_v38 = vpop.f32.mrb[0].mxu0 }
  0xf6   :  { %v811_v39 = vpop.f32.mrb[1].mxu0 }
  0xf7   :  { %v813_v40 = vpop.f32.mrb[2].mxu0 }
  0xf8   :  { %v815_v41 = vpop.f32.mrb[3].mxu0 }
  0xf9   :  { %v176_v29 = vadd.f32 %v820_v42, %v815_v41 }
  0xfd   :  { %v594_v43 = vpop.f32.mrb[4].mxu0 }
  0xfe   :  { %v197_v45 = vadd.f32 %v594_v43, %v820_v42  ;;  %v188_v46 = vpop.f32.mrb[5].mxu0  ;;  %v184_v43 = vadd.f32 %v813_v40, %v820_v42  ;;  %v181_v40 = vadd.f32 %v809_v38, %v820_v42 }
  0xff   :  { %v189_v47 = vadd.f32 %v820_v42, %v188_v46  ;;  %v595_v48 = vpop.f32.mrb[6].mxu0 }
 0x100   :  { %v200_v49 = vadd.f32 %v595_v48, %v820_v42  ;;  %v191_v50 = vpop.f32.mrb[7].mxu0  ;;  %v279_v51 = vmul.f32 %v825_v44, %v197_v45 }
 0x101   :  { %v192_v52 = vadd.f32 %v820_v42, %v191_v50  ;;  %v277_v53 = vmul.f32 %v825_v44, %v189_v47  ;;  %v261_v50 = vmul.f32 %v534_v37, %v184_v43 }
 0x102   :  { %v438_v54 = vpack.c.bf16 %v200_v49, %v197_v45  ;;  %297 = vadd.xlane.f32.xlu1 %v279_v51  ;;  %v280_v56 = vmul.f32 %v825_v44, %v200_v49  ;;  %v259_v45 = vmul.f32 %v534_v37, %v176_v29  ;;  %v173_v49 = vadd.f32 %v820_v42, %v811_v39  ;;  %v536_v39 = vld [vmem:[#allocation2] ss:$0 sm:$0xff] }
 0x103   :  { %293 = vadd.xlane.f32.xlu0 %v277_v53  ;;  %v437_v55 = vpack.c.bf16 %v192_v52, %v189_v47  ;;  %v278_v58 = vmul.f32 %v825_v44, %v192_v52 }
 0x104   :  { %v258_v52 = vmul.f32 %v534_v37, %v173_v49 }
 0x105   :  { %v598_v57 = vpop.f32.mrb[8].mxu0  ;;  %608 = vmatprep.subr.bf16.mxu1 %v437_v55 }
 0x106   :  { %299 = vadd.xlane.f32.xlu1 %v280_v56  ;;  %v204_v59 = vpop.f32.mrb[9].mxu0  ;;  %609 = vmatpush3.bf16.msra.mxu1 %v437_v55  ;;  %v213_v60 = vadd.f32 %v598_v57, %v820_v42 }
 0x107   :  { %v205_v61 = vadd.f32 %v820_v42, %v204_v59  ;;  %v599_v62 = vpop.f32.mrb[10].mxu0  ;;  %610 = vmatprep.subr.bf16.mxu1 %v438_v54  ;;  %295 = vadd.xlane.f32.xlu0 %v278_v58 }
 0x108   :  { %v216_v63 = vadd.f32 %v599_v62, %v820_v42  ;;  %v207_v0 = vpop.f32.mrb[11].mxu0  ;;  %v283_v8 = vmul.f32 %v825_v44, %v213_v60 }
 0x109   :  { %v208_v1 = vadd.f32 %v820_v42, %v207_v0  ;;  %v281_v2 = vmul.f32 %v825_v44, %v205_v61 }
 0x10a   :  { %v440_v3 = vpack.c.bf16 %v216_v63, %v213_v60  ;;  %611 = vmatpush3.bf16.msra.mxu1 %v438_v54  ;;  %v284_v6 = vmul.f32 %v825_v44, %v216_v63  ;;  %v260_v54 = vmul.f32 %v534_v37, %v181_v40 }
 0x10b   :  { %v439_v7 = vpack.c.bf16 %v208_v1, %v205_v61  ;;  %301 = vadd.xlane.f32.xlu0 %v281_v2  ;;  %v282_v9 = vmul.f32 %v825_v44, %v208_v1 }
 0x10c   :  { %307 = vadd.xlane.f32.xlu1 %v284_v6 }
 0x10d   :  { %v602_v10 = vpop.f32.mrb[12].mxu0  ;;  %612 = vmatprep.subr.bf16.mxu1 %v439_v7 }
 0x10e   :  { %v220_v14 = vpop.f32.mrb[13].mxu0  ;;  %613 = vmatpush3.bf16.msra.mxu1 %v439_v7  ;;  %v229_v15 = vadd.f32 %v602_v10, %v820_v42 }
 0x10f   :  { %v221_v16 = vadd.f32 %v820_v42, %v220_v14  ;;  %v603_v17 = vpop.f32.mrb[14].mxu0  ;;  %305 = vadd.xlane.f32.xlu0 %v283_v8  ;;  %614 = vmatprep.subr.bf16.mxu1 %v440_v3  ;;  %v357_v8 = vlaneseq }
 0x110   :  { %v232_v18 = vadd.f32 %v603_v17, %v820_v42  ;;  %303 = vadd.xlane.f32.xlu1 %v282_v9  ;;  %v223_v19 = vpop.f32.mrb[15].mxu0  ;;  %v287_v25 = vmul.f32 %v825_v44, %v229_v15 }
 0x111   :  { %v224_v20 = vadd.f32 %v820_v42, %v223_v19  ;;  %v285_v21 = vmul.f32 %v825_v44, %v221_v16  ;;  %v358_v10 = vshrl.u32 %v357_v8, 7 }
 0x112   :  { %v442_v22 = vpack.c.bf16 %v232_v18, %v229_v15  ;;  %615 = vmatpush3.bf16.msra.mxu1 %v440_v3  ;;  %v288_v23 = vmul.f32 %v825_v44, %v232_v18 }
 0x113   :  { %v441_v24 = vpack.c.bf16 %v224_v20, %v221_v16  ;;  %309 = vadd.xlane.f32.xlu0 %v285_v21  ;;  %v286_v26 = vmul.f32 %v825_v44, %v224_v20  ;;  %v359_v13 = vsub.s32 0, %v358_v10  ;;  %v543_v10 = vld [vmem:[%s933_s8] ss:$0 sm:$0xff] }
 0x114   :  { %315 = vadd.xlane.f32.xlu1 %v288_v23 }
 0x115   :  { %v606_v27 = vpop.f32.mrb[16].mxu0  ;;  %616 = vmatprep.subr.bf16.mxu1 %v441_v24 }
 0x116   :  { %v236_v30 = vpop.f32.mrb[17].mxu0  ;;  %617 = vmatpush3.bf16.msra.mxu1 %v441_v24  ;;  %v245_v31 = vadd.f32 %v606_v27, %v820_v42  ;;  %v384_v27 = vld [vmem:[%s932_s2 + $0x2] sm:$0x3] }
 0x117   :  { %v237_v32 = vadd.f32 %v820_v42, %v236_v30  ;;  %313 = vadd.xlane.f32.xlu0 %v287_v25  ;;  %618 = vmatprep.subr.bf16.mxu1 %v442_v22  ;;  %v607_v33 = vpop.f32.mrb[18].mxu0  ;;  %vm388_vm1 = vnez %v384_v27 }
 0x118   :  { %311 = vadd.xlane.f32.xlu1 %v286_v26  ;;  %v248_v34 = vadd.f32 %v607_v33, %v820_v42  ;;  %v239_v35 = vpop.f32.mrb[19].mxu0  ;;  %v291_v47 = vmul.f32 %v825_v44, %v245_v31  ;;  %v383_v26 = vld [vmem:[%s932_s2] sm:$0x3] }
 0x119   :  { %v289_v36 = vmul.f32 %v825_v44, %v237_v32  ;;  %v240_v41 = vadd.f32 %v820_v42, %v239_v35  ;;  %vm387_vm0 = vnez %v383_v26  ;;  %v386_v35 = vld [vmem:[%s932_s2 + $0x6] sm:$0x3] }
 0x11a   :  { %619 = vmatpush3.bf16.msra.mxu1 %v442_v22  ;;  %v444_v46 = vpack.c.bf16 %v248_v34, %v245_v31  ;;  %v292_v51 = vmul.f32 %v825_v44, %v248_v34  ;;  %v385_v34 = vld [vmem:[%s932_s2 + $0x4] sm:$0x3]  ;;  %v399_v43 = vsel %vm387_vm0, 16843009, %v662_v28  ;;  %vm390_vm3 = vnez %v386_v35 }
 0x11b   :  { %317 = vadd.xlane.f32.xlu0 %v289_v36  ;;  %v443_v48 = vpack.c.bf16 %v240_v41, %v237_v32  ;;  %v290_v53 = vmul.f32 %v825_v44, %v240_v41  ;;  %vm389_vm2 = vnez %v385_v34  ;;  %v402_v49 = vsel %vm390_vm3, 16843009, %v662_v28 }
 0x11c   :  { %264 = vadd.xlane.f32.xlu1 %v259_v45  ;;  %v400_v45 = vsel %vm388_vm1, 16843009, %v662_v28 }
 0x11d   :  { %620 = vmatprep.subr.bf16.mxu1 %v443_v48 }
 0x11e   :  { %621 = vmatpush3.bf16.msra.mxu1 %v443_v48  ;;  %v401_v48 = vsel %vm389_vm2, 16843009, %v662_v28 }
 0x11f   :  { %321 = vadd.xlane.f32.xlu0 %v291_v47  ;;  %622 = vmatprep.subr.bf16.mxu1 %v444_v46  ;;  %v404_v47 = vunpack.c.0.s8 %v400_v45  ;;  %v405_v40 = vunpack.c.0.s8 %v401_v48 }
 0x120   :  { %268 = vadd.xlane.f32.xlu1 %v261_v50 }
 0x121   :  { %vm894_vm5 = vcmp.ne.s32.totalorder %v404_v47, 0  ;;  %vm409_vm7 = vcmp.ne.s32.totalorder %v405_v40, 0 }
 0x122   :  { %623 = vmatpush3.bf16.msra.mxu1 %v444_v46  ;;  %v403_v46 = vunpack.c.0.s8 %v399_v43 }
 0x123   :  { %262 = vadd.xlane.f32.xlu0 %v258_v52  ;;  %v406_v52 = vunpack.c.0.s8 %v402_v49 }
 0x124   :  { %323 = vadd.xlane.f32.xlu1 %v292_v51  ;;  %vm890_vm4 = vcmp.ne.s32.totalorder %v403_v46, 0 }
 0x125   :  { %vm537_vm6 = vmpackc.low %vm894_vm5, %vm890_vm4  ;;  %vm410_vm8 = vcmp.ne.s32.totalorder %v406_v52, 0 }
 0x126   :  { %vm540_vm9 = vmpackc.low %vm410_vm8, %vm409_vm7 }
 0x127   :  { %266 = vadd.xlane.f32.xlu0 %v260_v54 }
 0x128   :  { %319 = vadd.xlane.f32.xlu1 %v290_v53 }
 0x13d   :  { %372 = vperm.xlu0 %629, %v536_v39  }
 0x18f   :  { %v298_v56 = vpop.xlane.xlu1 %297 }
 0x190   :  { %v294_v55 = vpop.xlane.xlu0 %293 }
 0x191   :  { %325 = vxpose.xlu1.b32.start [1/16] (narrow) %v294_v55, 8 }
 0x193   :  { %v300_v58 = vpop.xlane.xlu1 %299 }
 0x194   :  { %v296_v57 = vpop.xlane.xlu0 %295 }
 0x195   :  { %326 = vxpose.xlu1.b32.cont [2/16] (narrow) %v296_v57, 8 }
 0x198   :  { %v302_v38 = vpop.xlane.xlu0 %301 }
 0x199   :  { %327 = vxpose.xlu1.b32.cont [3/16] (narrow) %v298_v56, 8  ;;  %v308_v59 = vpop.xlane.xlu1 %307 }
 0x19c   :  { %v306_v60 = vpop.xlane.xlu0 %305 }
 0x19d   :  { %328 = vxpose.xlu1.b32.cont [4/16] (narrow) %v300_v58, 8  ;;  %v304_v42 = vpop.xlane.xlu1 %303 }
 0x1a0   :  { %v310_v62 = vpop.xlane.xlu0 %309 }
 0x1a1   :  { %329 = vxpose.xlu1.b32.cont [5/16] (narrow) %v302_v38, 8  ;;  %v316_v44 = vpop.xlane.xlu1 %315 }
 0x1a4   :  { %v314_v0 = vpop.xlane.xlu0 %313 }
 0x1a5   :  { %330 = vxpose.xlu1.b32.cont [6/16] (narrow) %v304_v42, 8  ;;  %v312_v61 = vpop.xlane.xlu1 %311 }
 0x1a8   :  { %v318_v3 = vpop.xlane.xlu0 %317 }
 0x1a9   :  { %331 = vxpose.xlu1.b32.cont [7/16] (narrow) %v306_v60, 8  ;;  %v265_v63 = vpop.xlane.xlu1 %264 }
 0x1ac   :  { %v322_v7 = vpop.xlane.xlu0 %321 }
 0x1ad   :  { %332 = vxpose.xlu1.b32.cont [8/16] (narrow) %v308_v59, 8  ;;  %v269_v1 = vpop.xlane.xlu1 %268 }
 0x1b0   :  { %v263_v9 = vpop.xlane.xlu0 %262 }
 0x1b1   :  { %333 = vxpose.xlu1.b32.cont [9/16] (narrow) %v310_v62, 8  ;;  %v324_v2 = vpop.xlane.xlu1 %323 }
 0x1b4   :  { %v267_v14 = vpop.xlane.xlu0 %266 }
 0x1b5   :  { %334 = vxpose.xlu1.b32.cont [10/16] (narrow) %v312_v61, 8  ;;  %v320_v6 = vpop.xlane.xlu1 %319 }
 0x1b9   :  { %335 = vxpose.xlu1.b32.cont [11/16] (narrow) %v314_v0, 8 }
 0x1bc   :  { %v373_v17 = vpop.permute.xlu0 %372 }
 0x1bd   :  { %336 = vxpose.xlu1.b32.cont [12/16] (narrow) %v316_v44, 8 }
 0x1c1   :  { %337 = vxpose.xlu1.b32.cont [13/16] (narrow) %v318_v3, 8 }
 0x1c5   :  { %338 = vxpose.xlu1.b32.cont [14/16] (narrow) %v320_v6, 8 }
 0x1c9   :  { %339 = vxpose.xlu1.b32.cont [15/16] (narrow) %v322_v7, 8 }
 0x1cd   :  { %340 = vxpose.xlu1.b32.end [16/16] (narrow) %v324_v2, 8 }
 0x211   :  { %v341_v15 = vpop.trf.xlu1 }
 0x212   :  { %v360_v16 = vrot.slane %v341_v15, %v359_v13 }
 0x214   :  { %v361_v18 = vadd.f32 %v360_v16, %v263_v9  ;;  %v362_v19 = vadd.f32 %v360_v16, %v265_v63  ;;  %v363_v20 = vadd.f32 %v360_v16, %v267_v14  ;;  %v364_v21 = vadd.f32 %v360_v16, %v269_v1 }
 0x216   :  { %v375_v22 = vadd.f32 %v373_v17, %v361_v18  ;;  %v376_v23 = vadd.f32 %v373_v17, %v362_v19  ;;  %v377_v24 = vadd.f32 %v373_v17, %v363_v20  ;;  %v378_v25 = vadd.f32 %v373_v17, %v364_v21 }
 0x218   :  { %638 = vtanh.f32 %v375_v22 }
 0x219   :  { %640 = vtanh.f32 %v376_v23 }
 0x21a   :  { %642 = vtanh.f32 %v377_v24 }
 0x21b   :  { %644 = vtanh.f32 %v378_v25 }
 0x222   :  { %v639_v29 = vpop.eup %638 }
 0x223   :  { %v641_v30 = vpop.eup %640  ;;  %v391_v31 = vmul.f32 1.442695, %v639_v29 }
 0x224   :  { %v643_v32 = vpop.eup %642  ;;  %v393_v33 = vmul.f32 1.442695, %v641_v30 }
 0x225   :  { %v645_v36 = vpop.eup %644  ;;  %646 = vpow2.f32 %v391_v31  ;;  %v395_v37 = vmul.f32 1.442695, %v643_v32 }
 0x226   :  { %648 = vpow2.f32 %v393_v33  ;;  %v397_v41 = vmul.f32 1.442695, %v645_v36 }
 0x227   :  { %650 = vpow2.f32 %v395_v37 }
 0x228   :  { %652 = vpow2.f32 %v397_v41 }
 0x22f   :  { %v647_v53 = vpop.eup %646 }
 0x230   :  { %v649_v54 = vpop.eup %648  ;;  %v411_v39 = vsel %vm890_vm4, %v647_v53, 0.0 }
 0x231   :  { %v651_v28 = vpop.eup %650  ;;  %415 = vadd.xlane.f32.xlu0 %v411_v39  ;;  %v538_v55 = vpack.c.bf16 %v649_v54, %v647_v53  ;;  %v412_v58 = vsel %vm894_vm5, %v649_v54, 0.0 }
 0x232   :  { %v653_v56 = vpop.eup %652  ;;  %v413_v59 = vsel %vm409_vm7, %v651_v28, 0.0 }
 0x233   :  { %624 = vmatprep.mubr.msk.bf16.mxu1 %vm537_vm6, %v538_v55  ;;  %v541_v57 = vpack.c.bf16 %v653_v56, %v651_v28  ;;  %v414_v38 = vsel %vm410_vm8, %v653_v56, 0.0 }
 0x235   :  { %625 = vmatmul.mubr.msk.bf16.vlgmr.msra.gmra.mrb[0].mxu1 %vm540_vm9, %v541_v57  ;;  %417 = vadd.xlane.f32.xlu0 %v412_v58 }
 0x239   :  { %419 = vadd.xlane.f32.xlu0 %v413_v59 }
 0x23d   :  { %421 = vadd.xlane.f32.xlu0 %v414_v38 }
 0x2be   :  { %v416_v42 = vpop.xlane.xlu0 %415 }
 0x2bf   :  { %vm423_vm11 = vcmp.gt.f32.partialorder %v416_v42, 0.0 }
 0x2c0   :  { %v427_v63 = vsel %vm423_vm11, %v416_v42, 1.0 }
 0x2c2   :  { %v418_v60 = vpop.xlane.xlu0 %417 }
 0x2c3   :  { %vm424_vm13 = vcmp.gt.f32.partialorder %v418_v60, 0.0 }
 0x2c4   :  { %v428_v1 = vsel %vm424_vm13, %v418_v60, 1.0 }
 0x2c6   :  { %v420_v44 = vpop.xlane.xlu0 %419 }
 0x2c7   :  { %vm425_vm10 = vcmp.gt.f32.partialorder %v420_v44, 0.0 }
 0x2c8   :  { %v429_v62 = vsel %vm425_vm10, %v420_v44, 1.0 }
 0x2c9   :  { %654 = vrcp.f32 %v429_v62 }
 0x2ca   :  { %v422_v61 = vpop.xlane.xlu0 %421  ;;  %656 = vrcp.f32 %v427_v63 }
 0x2cb   :  { %vm426_vm12 = vcmp.gt.f32.partialorder %v422_v61, 0.0 }
 0x2cc   :  { %v430_v0 = vsel %vm426_vm12, %v422_v61, 1.0 }
 0x2cd   :  { %658 = vrcp.f32 %v430_v0 }
 0x2ce   :  { %660 = vrcp.f32 %v428_v1 }
 0x2d3   :  { %v655_v2 = vpop.eup %654 }
 0x2d4   :  { %v657_v6 = vpop.eup %656 }
 0x2d7   :  { %v659_v9 = vpop.eup %658 }
 0x2d8   :  { %v661_v15 = vpop.eup %660 }
 0x308   :  { %v626_v3 = vpop.f32.mrb[0].mxu1 }
 0x309   :  { %v496_v7 = vmul.f32 %v655_v2, %v626_v3  ;;  %v479_v8 = vpop.f32.mrb[1].mxu1 }
 0x30a   :  { %v494_v13 = vmul.f32 %v657_v6, %v479_v8  ;;  %v627_v14 = vpop.f32.mrb[2].mxu1 }
 0x30b   :  { %v500_v16 = vadd.f32 %v496_v7, %v752_v11  ;;  %v497_v17 = vmul.f32 %v659_v9, %v627_v14  ;;  %v482_v18 = vpop.f32.mrb[3].mxu1 }
 0x30c   :  { %v498_v19 = vadd.f32 %v494_v13, %v728_v4  ;;  %v495_v20 = vmul.f32 %v661_v15, %v482_v18 }
 0x30d   :  { %v511_v21 = vadd.f32 %v543_v10, %v500_v16  ;;  %v501_v22 = vadd.f32 %v497_v17, %v757_v12 }
 0x30e   :  { %v509_v23 = vadd.f32 %v543_v10, %v498_v19  ;;  %v499_v24 = vadd.f32 %v495_v20, %v733_v5 }
 0x30f   :  { %v515_v25 = vmul.f32 0.5, %v511_v21  ;;  %v512_v26 = vadd.f32 %v543_v10, %v501_v22 }
 0x310   :  { %v513_v27 = vmul.f32 0.5, %v509_v23  ;;  %v510_v29 = vadd.f32 %v543_v10, %v499_v24 }
 0x311   :  { %519 = vst [vmem:[%s934_s9 + $0x10] sm:$0xff] %v515_v25  ;;  %v516_v11 = vmul.f32 0.5, %v512_v26 }
 0x312   :  { %517 = vst [vmem:[%s934_s9] sm:$0xff] %v513_v27  ;;  %v514_v4 = vmul.f32 0.5, %v510_v29 }
 0x313   :  { %520 = vst [vmem:[%s934_s9 + $0x18] sm:$0xff] %v516_v11 }
 0x314   :  { %518 = vst [vmem:[%s934_s9 + $0x8] sm:$0xff] %v514_v4 }

// kernel: forward.9
= control target key start
LH: loop header
LB: loop body
LE: loop exit
PB: predicated region body
PF: predicated region fallthrough
CT: control target
= control target key end

     0   :  { %v1286_v0 = vmov 0.0   ;;  %vm1287_vm0 = vmmov 0   ;;  %s1622_s1 = inlined_call_operand.vmem [shape: bf16[128,128], index: 1, kind: input, shape index: {}]   ;;  %s1623_s3 = inlined_call_operand.vmem [shape: bf16[4,128,128], index: 3, kind: input, shape index: {}]   ;;  %s1624_s0 = inlined_call_operand.vmem [shape: f32[8,128], index: 0, kind: input, shape index: {}]   ;;  %s1625_s2 = inlined_call_operand.vmem [shape: f32[1,128], index: 2, kind: input, shape index: {}]   ;;  %s1626_s4 = inlined_call_operand.vmem [shape: f32[4,1,128], index: 4, kind: input, shape index: {}]   ;;  %s1627_s5 = inlined_call_operand.vmem [shape: f32[4,1,128], index: 5, kind: input, shape index: {}]   ;;  %s1628_s6 = inlined_call_operand.vmem [shape: f32[4,1,128], index: 6, kind: input, shape index: {}]   ;;  %s1629_s7 = inlined_call_operand.vmem [shape: f32[2,1,128], index: 7, kind: input, shape index: {}]   ;;  %s1630_s8 = inlined_call_operand.vmem [shape: f32[2,1,128], index: 8, kind: input, shape index: {}]   ;;  %s1631_s9 = inlined_call_operand.vmem [shape: bf16[128,128], index: 9, kind: input, shape index: {}]   ;;  %s1632_s10 = inlined_call_operand.vmem [shape: f32[1,128], index: 10, kind: input, shape index: {}]   ;;  %s1633_s11 = inlined_call_operand.vmem [shape: f32[8,128], index: 11, kind: output, shape index: {}]  }
   0x1   :  { %1088 = vmatprep.subr.bf16.mxu0 %v1286_v0  ;;  %v1210_v1 = vld [vmem:[%s1622_s1] sm:$0xff]   ;;  %1104 = vmatprep.mubr.msk.bf16.mxu0 %vm1287_vm0, %v1286_v0  ;;  %v1211_v2 = vld [vmem:[%s1622_s1 + $0x8] sm:$0xff]   ;;  %v1212_v3 = vld [vmem:[%s1622_s1 + $0x10] sm:$0xff]  }
   0x2   :  { %1108 = vmatprep.subr.bf16.mxu1 %v1286_v0  ;;  %1124 = vmatprep.mubr.msk.bf16.mxu1 %vm1287_vm0, %v1286_v0  ;;  %v1218_v4 = vld [vmem:[%s1623_s3] sm:$0xff]   ;;  %v1213_v5 = vld [vmem:[%s1622_s1 + $0x18] sm:$0xff]   ;;  %v1219_v6 = vld [vmem:[%s1623_s3 + $0x8] sm:$0xff]  }
   0x3   :  { %1089 = vmatpush3.bf16.msra.mxu0 %v1210_v1  ;;  %1109 = vmatpush3.bf16.msra.mxu1 %v1218_v4  ;;  %v1214_v7 = vld [vmem:[%s1622_s1 + $0x20] sm:$0xff]   ;;  %v1220_v8 = vld [vmem:[%s1623_s3 + $0x10] sm:$0xff]   ;;  %v1215_v9 = vld [vmem:[%s1622_s1 + $0x28] sm:$0xff]  }
   0x4   :  { %1090 = vmatprep.subr.bf16.mxu0 %v1286_v0  ;;  %1110 = vmatprep.subr.bf16.mxu1 %v1286_v0  ;;  %v1221_v10 = vld [vmem:[%s1623_s3 + $0x18] sm:$0xff]   ;;  %v1216_v11 = vld [vmem:[%s1622_s1 + $0x30] sm:$0xff]   ;;  %v1222_v12 = vld [vmem:[%s1623_s3 + $0x20] sm:$0xff]  }
   0x5   :  { %v1217_v13 = vld [vmem:[%s1622_s1 + $0x38] sm:$0xff]   ;;  %v39_v14 = vld [vmem:[%s1624_s0] sm:$0xff]  ;;  %v1223_v15 = vld [vmem:[%s1623_s3 + $0x28] sm:$0xff]  }
   0x6   :  { %v57_v16 = vpack.c.bf16 %v39_v14, %v39_v14  ;;  %v1224_v17 = vld [vmem:[%s1623_s3 + $0x30] sm:$0xff]   ;;  %v1225_v18 = vld [vmem:[%s1623_s3 + $0x38] sm:$0xff]   ;;  %v908_v19 = vld [vmem:[%s1625_s2] ss:$0 sm:$0xff] }
   0x7   :  { %1091 = vmatpush3.bf16.msra.mxu0 %v1211_v2  ;;  %1111 = vmatpush3.bf16.msra.mxu1 %v1219_v6  ;;  %v917_v26 = vld [vmem:[%s1626_s4] ss:$0 sm:$0xff]  ;;  %v1227_v34 = vld [vmem:[%s1623_s3 + $0x48] sm:$0xff]   ;;  %v1228_v39 = vld [vmem:[%s1623_s3 + $0x50] sm:$0xff]  }
   0x8   :  { %1092 = vmatprep.subr.bf16.mxu0 %v1286_v0  ;;  %1112 = vmatprep.subr.bf16.mxu1 %v1286_v0  ;;  %v1226_v33 = vld [vmem:[%s1623_s3 + $0x40] sm:$0xff]   ;;  %v1229_v40 = vld [vmem:[%s1623_s3 + $0x58] sm:$0xff]   ;;  %v1231_v42 = vld [vmem:[%s1623_s3 + $0x68] sm:$0xff]  }
   0x9   :  { %v1230_v41 = vld [vmem:[%s1623_s3 + $0x60] sm:$0xff]   ;;  %v1232_v43 = vld [vmem:[%s1623_s3 + $0x70] sm:$0xff]   ;;  %v1233_v44 = vld [vmem:[%s1623_s3 + $0x78] sm:$0xff]  }
   0xa   :  { %v926_v49 = vld [vmem:[%s1627_s5] ss:$0 sm:$0xff]  ;;  %v945_v55 = vld [vmem:[%s1626_s4 + $0x1] ss:$0 sm:$0xff] }
   0xb   :  { %1093 = vmatpush3.bf16.msra.mxu0 %v1212_v3  ;;  %1113 = vmatpush3.bf16.msra.mxu1 %v1220_v8  ;;  %v927_v51 = vld [vmem:[%s1628_s6] ss:$0 sm:$0xff] }
   0xc   :  { %1094 = vmatprep.subr.bf16.mxu0 %v1286_v0  ;;  %1114 = vmatprep.subr.bf16.mxu1 %v1286_v0  ;;  %v1234_v14 = vld [vmem:[%s1623_s3 + $0x80] sm:$0xff]  }
   0xf   :  { %1095 = vmatpush3.bf16.msra.mxu0 %v1213_v5  ;;  %1115 = vmatpush3.bf16.msra.mxu1 %v1221_v10 }
  0x10   :  { %1096 = vmatprep.subr.bf16.mxu0 %v1286_v0  ;;  %1116 = vmatprep.subr.bf16.mxu1 %v1286_v0 }
  0x13   :  { %1097 = vmatpush3.bf16.msra.mxu0 %v1214_v7  ;;  %1117 = vmatpush3.bf16.msra.mxu1 %v1222_v12  ;;  %v956_v7 = vld [vmem:[%s1627_s5 + $0x1] ss:$0 sm:$0xff] }
  0x14   :  { %1098 = vmatprep.subr.bf16.mxu0 %v1286_v0  ;;  %1118 = vmatprep.subr.bf16.mxu1 %v1286_v0 }
  0x17   :  { %1099 = vmatpush3.bf16.msra.mxu0 %v1215_v9  ;;  %1119 = vmatpush3.bf16.msra.mxu1 %v1223_v15  ;;  %v957_v9 = vld [vmem:[%s1628_s6 + $0x1] ss:$0 sm:$0xff]  ;;  %v1235_v15 = vld [vmem:[%s1623_s3 + $0x88] sm:$0xff]  }
  0x18   :  { %1100 = vmatprep.subr.bf16.mxu0 %v1286_v0  ;;  %1120 = vmatprep.subr.bf16.mxu1 %v1286_v0 }
  0x1b   :  { %1101 = vmatpush3.bf16.msra.mxu0 %v1216_v11  ;;  %1121 = vmatpush3.bf16.msra.mxu1 %v1224_v17 }
  0x1c   :  { %1102 = vmatprep.subr.bf16.mxu0 %v1286_v0  ;;  %1122 = vmatprep.subr.bf16.mxu1 %v1286_v0 }
  0x1f   :  { %1103 = vmatpush3.bf16.msra.mxu0 %v1217_v13  ;;  %1123 = vmatpush3.bf16.msra.mxu1 %v1225_v18 }
  0x20   :  { %1128 = vmatprep.subr.bf16.mxu0 %v1286_v0  ;;  %1148 = vmatprep.subr.bf16.mxu1 %v1286_v0 }
  0x22   :  { %1105 = vmatmul.mubr.bf16.vlgmr.msra.gmra.mrb[0].mxu0 %v57_v16 }
  0x23   :  { %1144 = vmatprep.mubr.msk.bf16.mxu0 %vm1287_vm0, %v1286_v0  ;;  %1129 = vmatpush3.bf16.msra.mxu0 %v1226_v33 }
  0x24   :  { %1130 = vmatprep.subr.bf16.mxu0 %v1286_v0 }
  0x27   :  { %1131 = vmatpush3.bf16.msra.mxu0 %v1227_v34 }
  0x28   :  { %1132 = vmatprep.subr.bf16.mxu0 %v1286_v0 }
  0x2b   :  { %1133 = vmatpush3.bf16.msra.mxu0 %v1228_v39 }
  0x2c   :  { %1134 = vmatprep.subr.bf16.mxu0 %v1286_v0 }
  0x2f   :  { %1135 = vmatpush3.bf16.msra.mxu0 %v1229_v40 }
  0x30   :  { %1136 = vmatprep.subr.bf16.mxu0 %v1286_v0 }
  0x33   :  { %1137 = vmatpush3.bf16.msra.mxu0 %v1230_v41 }
  0x34   :  { %1138 = vmatprep.subr.bf16.mxu0 %v1286_v0 }
  0x37   :  { %1139 = vmatpush3.bf16.msra.mxu0 %v1231_v42 }
  0x38   :  { %1140 = vmatprep.subr.bf16.mxu0 %v1286_v0 }
  0x3b   :  { %1141 = vmatpush3.bf16.msra.mxu0 %v1232_v43  ;;  %v1242_v43 = vld [vmem:[%s1623_s3 + $0xc0] sm:$0xff]  }
  0x3c   :  { %1142 = vmatprep.subr.bf16.mxu0 %v1286_v0 }
  0x3f   :  { %1143 = vmatpush3.bf16.msra.mxu0 %v1233_v44  ;;  %v1243_v44 = vld [vmem:[%s1623_s3 + $0xc8] sm:$0xff]  }
  0x40   :  { %1168 = vmatprep.subr.bf16.mxu0 %v1286_v0 }
  0xf5   :  { %v146_v20 = vpop.f32.mrb[0].mxu0 }
  0xf6   :  { %v1426_v21 = vadd.f32 %v908_v19, %v146_v20  ;;  %v1106_v22 = vpop.f32.mrb[1].mxu0  ;;  %v1236_v20 = vld [vmem:[%s1623_s3 + $0x90] sm:$0xff]  }
  0xf7   :  { %v149_v23 = vpop.f32.mrb[2].mxu0  ;;  %v1238_v22 = vld [vmem:[%s1623_s3 + $0xa0] sm:$0xff]  }
  0xf8   :  { %v169_v24 = vpack.c.bf16 %v1426_v21, %v1426_v21  ;;  %v1107_v25 = vpop.f32.mrb[3].mxu0  ;;  %v1239_v23 = vld [vmem:[%s1623_s3 + $0xa8] sm:$0xff]  }
  0xf9   :  { %v1241_v25 = vld [vmem:[%s1623_s3 + $0xb8] sm:$0xff]  }
  0xfa   :  { %1125 = vmatmul.mubr.bf16.vlgmr.msra.gmra.mrb[0].mxu1 %v169_v24  ;;  %v1240_v24 = vld [vmem:[%s1623_s3 + $0xb0] sm:$0xff]  }
  0xfb   :  { %1164 = vmatprep.mubr.msk.bf16.mxu1 %vm1287_vm0, %v1286_v0  ;;  %1149 = vmatpush3.bf16.msra.mxu1 %v1234_v14 }
  0xfc   :  { %1150 = vmatprep.subr.bf16.mxu1 %v1286_v0 }
  0xff   :  { %1151 = vmatpush3.bf16.msra.mxu1 %v1235_v15 }
 0x100   :  { %1152 = vmatprep.subr.bf16.mxu1 %v1286_v0 }
 0x103   :  { %1153 = vmatpush3.bf16.msra.mxu1 %v1236_v20 }
 0x104   :  { %1154 = vmatprep.subr.bf16.mxu1 %v1286_v0 }
 0x1cd   :  { %v258_v27 = vpop.f32.mrb[0].mxu1 }
 0x1ce   :  { %v259_v28 = vadd.f32 %v917_v26, %v258_v27  ;;  %v1126_v29 = vpop.f32.mrb[1].mxu1 }
 0x1cf   :  { %v261_v30 = vpop.f32.mrb[2].mxu1 }
 0x1d0   :  { %1258 = vtanh.f32 %v259_v28  ;;  %v1127_v31 = vpop.f32.mrb[3].mxu1  ;;  %v958_v30 = vld [vmem:[%s1629_s7] ss:$0 sm:$0xff] }
 0x1da   :  { %v1259_v32 = vpop.eup %1258 }
 0x1db   :  { %267 = vadd.xlane.f32.xlu0 %v1259_v32 }
 0x268   :  { %v268_v35 = vpop.xlane.xlu0 %267 }
 0x269   :  { %v270_v36 = vmul.f32 0.0078125, %v268_v35 }
 0x26b   :  { %v271_v37 = vsub.f32 %v1259_v32, %v270_v36  ;;  %v959_v32 = vld [vmem:[%s1630_s8] ss:$0 sm:$0xff]  ;;  %v977_v36 = vld [vmem:[%s1626_s4 + $0x2] ss:$0 sm:$0xff] }
 0x26d   :  { %v272_v38 = vmul.f32 %v271_v37, %v271_v37 }
 0x26f   :  { %273 = vadd.xlane.f32.xlu0 %v272_v38 }
 0x2fc   :  { %v274_v45 = vpop.xlane.xlu0 %273 }
 0x2fd   :  { %v275_v46 = vmul.f32 0.0078125, %v274_v45 }
 0x2ff   :  { %v276_v47 = vadd.f32 1e-05, %v275_v46 }
 0x301   :  { %1260 = vrsqrt.f32 %v276_v47 }
 0x30b   :  { %v1261_v48 = vpop.eup %1260 }
 0x30c   :  { %v278_v50 = vmul.f32 %v1261_v48, %v271_v37 }
 0x30e   :  { %v285_v52 = vmul.f32 %v926_v49, %v278_v50  ;;  %v1244_v49 = vld [vmem:[%s1623_s3 + $0xd0] sm:$0xff]   ;;  %v1245_v50 = vld [vmem:[%s1623_s3 + $0xd8] sm:$0xff]  }
 0x310   :  { %v292_v53 = vadd.f32 %v927_v51, %v285_v52  ;;  %v1246_v51 = vld [vmem:[%s1623_s3 + $0xe0] sm:$0xff]   ;;  %v1247_v52 = vld [vmem:[%s1623_s3 + $0xe8] sm:$0xff]  }
 0x312   :  { %v312_v54 = vpack.c.bf16 %v292_v53, %v292_v53  ;;  %v1248_v53 = vld [vmem:[%s1623_s3 + $0xf0] sm:$0xff]  }
 0x314   :  { %1145 = vmatmul.mubr.bf16.vlgmr.msra.gmra.mrb[4].mxu0 %v312_v54  ;;  %v1249_v54 = vld [vmem:[%s1623_s3 + $0xf8] sm:$0xff]  }
 0x315   :  { %1184 = vmatprep.mubr.msk.bf16.mxu0 %vm1287_vm0, %v1286_v0  ;;  %1169 = vmatpush3.bf16.msra.mxu0 %v1242_v43 }
 0x316   :  { %1170 = vmatprep.subr.bf16.mxu0 %v1286_v0 }
 0x319   :  { %1171 = vmatpush3.bf16.msra.mxu0 %v1243_v44 }
 0x31a   :  { %1172 = vmatprep.subr.bf16.mxu0 %v1286_v0 }
 0x31d   :  { %1173 = vmatpush3.bf16.msra.mxu0 %v1244_v49 }
 0x31e   :  { %1174 = vmatprep.subr.bf16.mxu0 %v1286_v0 }
 0x321   :  { %1175 = vmatpush3.bf16.msra.mxu0 %v1245_v50 }
 0x322   :  { %1176 = vmatprep.subr.bf16.mxu0 %v1286_v0 }
 0x325   :  { %1177 = vmatpush3.bf16.msra.mxu0 %v1246_v51 }
 0x326   :  { %1178 = vmatprep.subr.bf16.mxu0 %v1286_v0 }
 0x329   :  { %1179 = vmatpush3.bf16.msra.mxu0 %v1247_v52 }
 0x32a   :  { %1180 = vmatprep.subr.bf16.mxu0 %v1286_v0 }
 0x32d   :  { %1181 = vmatpush3.bf16.msra.mxu0 %v1248_v53 }
 0x32e   :  { %1182 = vmatprep.subr.bf16.mxu0 %v1286_v0 }
 0x331   :  { %1183 = vmatpush3.bf16.msra.mxu0 %v1249_v54 }
 0x3e7   :  { %v401_v56 = vpop.f32.mrb[4].mxu0 }
 0x3e8   :  { %v402_v57 = vadd.f32 %v945_v55, %v401_v56  ;;  %v1146_v58 = vpop.f32.mrb[5].mxu0 }
 0x3e9   :  { %v404_v59 = vpop.f32.mrb[6].mxu0 }
 0x3ea   :  { %1262 = vtanh.f32 %v402_v57  ;;  %v1147_v60 = vpop.f32.mrb[7].mxu0  ;;  %v988_v59 = vld [vmem:[%s1627_s5 + $0x2] ss:$0 sm:$0xff] }
 0x3f4   :  { %v1263_v61 = vpop.eup %1262 }
 0x3f5   :  { %412 = vadd.xlane.f32.xlu1 %v1263_v61 }
 0x482   :  { %v413_v62 = vpop.xlane.xlu1 %412 }
 0x483   :  { %v414_v63 = vmul.f32 0.0078125, %v413_v62 }
 0x485   :  { %v415_v1 = vsub.f32 %v1263_v61, %v414_v63  ;;  %v989_v61 = vld [vmem:[%s1628_s6 + $0x2] ss:$0 sm:$0xff] }
 0x487   :  { %v416_v2 = vmul.f32 %v415_v1, %v415_v1 }
 0x489   :  { %417 = vadd.xlane.f32.xlu1 %v416_v2  ;;  %v1007_v2 = vld [vmem:[%s1626_s4 + $0x3] ss:$0 sm:$0xff] }
 0x516   :  { %v418_v3 = vpop.xlane.xlu1 %417 }
 0x517   :  { %v419_v4 = vmul.f32 0.0078125, %v418_v3 }
 0x519   :  { %v420_v5 = vadd.f32 1e-05, %v419_v4 }
 0x51b   :  { %1264 = vrsqrt.f32 %v420_v5 }
 0x525   :  { %v1265_v6 = vpop.eup %1264 }
 0x526   :  { %v422_v8 = vmul.f32 %v1265_v6, %v415_v1 }
 0x528   :  { %v429_v10 = vmul.f32 %v956_v7, %v422_v8 }
 0x52a   :  { %v436_v11 = vadd.f32 %v957_v9, %v429_v10 }
 0x52c   :  { %v437_v12 = vadd.f32 %v436_v11, %v1426_v21  ;;  %v1237_v21 = vld [vmem:[%s1623_s3 + $0x98] sm:$0xff]  }
 0x52d   :  { %1155 = vmatpush3.bf16.msra.mxu1 %v1237_v21 }
 0x52e   :  { %1266 = vtanh.f32 %v437_v12  ;;  %1156 = vmatprep.subr.bf16.mxu1 %v1286_v0 }
 0x531   :  { %1157 = vmatpush3.bf16.msra.mxu1 %v1238_v22 }
 0x532   :  { %1158 = vmatprep.subr.bf16.mxu1 %v1286_v0 }
 0x535   :  { %1159 = vmatpush3.bf16.msra.mxu1 %v1239_v23 }
 0x536   :  { %1160 = vmatprep.subr.bf16.mxu1 %v1286_v0 }
 0x538   :  { %v1267_v13 = vpop.eup %1266 }
 0x539   :  { %441 = vadd.xlane.f32.xlu0 %v1267_v13  ;;  %1161 = vmatpush3.bf16.msra.mxu1 %v1240_v24  ;;  %v1250_v24 = vld [vmem:[%s1631_s9] sm:$0xff]  }
 0x53a   :  { %1162 = vmatprep.subr.bf16.mxu1 %v1286_v0 }
 0x53d   :  { %1163 = vmatpush3.bf16.msra.mxu1 %v1241_v25  ;;  %v1251_v25 = vld [vmem:[%s1631_s9 + $0x8] sm:$0xff]  }
 0x53e   :  { %1188 = vmatprep.subr.bf16.mxu1 %v1286_v0 }
 0x5c6   :  { %v442_v16 = vpop.xlane.xlu0 %441 }
 0x5c7   :  { %v443_v17 = vmul.f32 0.0078125, %v442_v16 }
 0x5c9   :  { %v444_v18 = vsub.f32 %v1267_v13, %v443_v17  ;;  %v1018_v17 = vld [vmem:[%s1627_s5 + $0x3] ss:$0 sm:$0xff] }
 0x5cb   :  { %v445_v19 = vmul.f32 %v444_v18, %v444_v18 }
 0x5cd   :  { %446 = vadd.xlane.f32.xlu1 %v445_v19  ;;  %v1019_v19 = vld [vmem:[%s1628_s6 + $0x3] ss:$0 sm:$0xff] }
 0x65a   :  { %v447_v26 = vpop.xlane.xlu1 %446 }
 0x65b   :  { %v448_v27 = vmul.f32 0.0078125, %v447_v26 }
 0x65d   :  { %v449_v28 = vadd.f32 1e-05, %v448_v27 }
 0x65f   :  { %1268 = vrsqrt.f32 %v449_v28 }
 0x669   :  { %v1269_v29 = vpop.eup %1268 }
 0x66a   :  { %v451_v31 = vmul.f32 %v1269_v29, %v444_v18 }
 0x66c   :  { %v458_v33 = vmul.f32 %v958_v30, %v451_v31  ;;  %v1252_v30 = vld [vmem:[%s1631_s9 + $0x10] sm:$0xff]   ;;  %v1253_v31 = vld [vmem:[%s1631_s9 + $0x18] sm:$0xff]  }
 0x66e   :  { %v1523_v34 = vadd.f32 %v959_v32, %v458_v33  ;;  %v1254_v32 = vld [vmem:[%s1631_s9 + $0x20] sm:$0xff]   ;;  %v1255_v33 = vld [vmem:[%s1631_s9 + $0x28] sm:$0xff]  }
 0x670   :  { %v485_v35 = vpack.c.bf16 %v1523_v34, %v1523_v34 }
 0x672   :  { %1165 = vmatmul.mubr.bf16.vlgmr.msra.gmra.mrb[4].mxu1 %v485_v35  ;;  %v1257_v35 = vld [vmem:[%s1631_s9 + $0x38] sm:$0xff]  }
 0x673   :  { %1204 = vmatprep.mubr.msk.bf16.mxu1 %vm1287_vm0, %v1286_v0  ;;  %1189 = vmatpush3.bf16.msra.mxu1 %v1250_v24 }
 0x674   :  { %1190 = vmatprep.subr.bf16.mxu1 %v1286_v0 }
 0x677   :  { %1191 = vmatpush3.bf16.msra.mxu1 %v1251_v25 }
 0x678   :  { %1192 = vmatprep.subr.bf16.mxu1 %v1286_v0 }
 0x67b   :  { %1193 = vmatpush3.bf16.msra.mxu1 %v1252_v30 }
 0x67c   :  { %1194 = vmatprep.subr.bf16.mxu1 %v1286_v0 }
 0x67f   :  { %1195 = vmatpush3.bf16.msra.mxu1 %v1253_v31 }
 0x680   :  { %1196 = vmatprep.subr.bf16.mxu1 %v1286_v0 }
 0x683   :  { %1197 = vmatpush3.bf16.msra.mxu1 %v1254_v32 }
 0x684   :  { %1198 = vmatprep.subr.bf16.mxu1 %v1286_v0 }
 0x687   :  { %1199 = vmatpush3.bf16.msra.mxu1 %v1255_v33 }
 0x688   :  { %1200 = vmatprep.subr.bf16.mxu1 %v1286_v0 }
 0x745   :  { %v574_v37 = vpop.f32.mrb[4].mxu1 }
 0x746   :  { %v575_v38 = vadd.f32 %v977_v36, %v574_v37  ;;  %v1166_v39 = vpop.f32.mrb[5].mxu1 }
 0x747   :  { %v577_v40 = vpop.f32.mrb[6].mxu1 }
 0x748   :  { %1270 = vtanh.f32 %v575_v38  ;;  %v1167_v41 = vpop.f32.mrb[7].mxu1  ;;  %v1022_v40 = vld [vmem:[%s1629_s7 + $0x1] ss:$0 sm:$0xff] }
 0x752   :  { %v1271_v42 = vpop.eup %1270 }
 0x753   :  { %585 = vadd.xlane.f32.xlu0 %v1271_v42 }
 0x7e0   :  { %v586_v45 = vpop.xlane.xlu0 %585 }
 0x7e1   :  { %v587_v46 = vmul.f32 0.0078125, %v586_v45 }
 0x7e3   :  { %v588_v47 = vsub.f32 %v1271_v42, %v587_v46  ;;  %v1023_v42 = vld [vmem:[%s1630_s8 + $0x1] ss:$0 sm:$0xff] }
 0x7e5   :  { %v589_v48 = vmul.f32 %v588_v47, %v588_v47 }
 0x7e7   :  { %590 = vadd.xlane.f32.xlu1 %v589_v48 }
 0x874   :  { %v591_v55 = vpop.xlane.xlu1 %590 }
 0x875   :  { %v592_v56 = vmul.f32 0.0078125, %v591_v55 }
 0x877   :  { %v593_v57 = vadd.f32 1e-05, %v592_v56 }
 0x879   :  { %1272 = vrsqrt.f32 %v593_v57 }
 0x883   :  { %v1273_v58 = vpop.eup %1272 }
 0x884   :  { %v595_v60 = vmul.f32 %v1273_v58, %v588_v47 }
 0x886   :  { %v602_v62 = vmul.f32 %v988_v59, %v595_v60 }
 0x888   :  { %v609_v63 = vadd.f32 %v989_v61, %v602_v62 }
 0x88a   :  { %v629_v1 = vpack.c.bf16 %v609_v63, %v609_v63 }
 0x88c   :  { %1185 = vmatmul.mubr.bf16.vlgmr.msra.gmra.mrb[8].mxu0 %v629_v1 }
 0x95f   :  { %v718_v3 = vpop.f32.mrb[8].mxu0 }
 0x960   :  { %v719_v4 = vadd.f32 %v1007_v2, %v718_v3  ;;  %v1186_v5 = vpop.f32.mrb[9].mxu0 }
 0x961   :  { %v721_v6 = vpop.f32.mrb[10].mxu0 }
 0x962   :  { %1274 = vtanh.f32 %v719_v4  ;;  %v1187_v7 = vpop.f32.mrb[11].mxu0 }
 0x96c   :  { %v1275_v8 = vpop.eup %1274 }
 0x96d   :  { %729 = vadd.xlane.f32.xlu0 %v1275_v8 }
 0x9fa   :  { %v730_v9 = vpop.xlane.xlu0 %729 }
 0x9fb   :  { %v731_v10 = vmul.f32 0.0078125, %v730_v9 }
 0x9fd   :  { %v732_v11 = vsub.f32 %v1275_v8, %v731_v10 }
 0x9ff   :  { %v733_v12 = vmul.f32 %v732_v11, %v732_v11 }
 0xa01   :  { %734 = vadd.xlane.f32.xlu1 %v733_v12 }
 0xa8e   :  { %v735_v13 = vpop.xlane.xlu1 %734 }
 0xa8f   :  { %v736_v14 = vmul.f32 0.0078125, %v735_v13 }
 0xa91   :  { %v737_v15 = vadd.f32 1e-05, %v736_v14 }
 0xa93   :  { %1276 = vrsqrt.f32 %v737_v15 }
 0xa9d   :  { %v1277_v16 = vpop.eup %1276 }
 0xa9e   :  { %v739_v18 = vmul.f32 %v1277_v16, %v732_v11 }
 0xaa0   :  { %v746_v20 = vmul.f32 %v1018_v17, %v739_v18 }
 0xaa2   :  { %v753_v21 = vadd.f32 %v1019_v19, %v746_v20 }
 0xaa4   :  { %v754_v22 = vadd.f32 %v753_v21, %v1523_v34  ;;  %v1256_v34 = vld [vmem:[%s1631_s9 + $0x30] sm:$0xff]  }
 0xaa5   :  { %1201 = vmatpush3.bf16.msra.mxu1 %v1256_v34 }
 0xaa6   :  { %1278 = vtanh.f32 %v754_v22  ;;  %1202 = vmatprep.subr.bf16.mxu1 %v1286_v0  ;;  %v1024_v0 = vld [vmem:[%s1632_s10] ss:$0 sm:$0xff] }
 0xaa9   :  { %1203 = vmatpush3.bf16.msra.mxu1 %v1257_v35 }
 0xab0   :  { %v1279_v23 = vpop.eup %1278 }
 0xab1   :  { %760 = vadd.xlane.f32.xlu0 %v1279_v23 }
 0xb3e   :  { %v761_v26 = vpop.xlane.xlu0 %760 }
 0xb3f   :  { %v762_v27 = vmul.f32 0.0078125, %v761_v26 }
 0xb41   :  { %v763_v28 = vsub.f32 %v1279_v23, %v762_v27 }
 0xb43   :  { %v764_v29 = vmul.f32 %v763_v28, %v763_v28 }
 0xb45   :  { %765 = vadd.xlane.f32.xlu1 %v764_v29 }
 0xbd2   :  { %v766_v36 = vpop.xlane.xlu1 %765 }
 0xbd3   :  { %v767_v37 = vmul.f32 0.0078125, %v766_v36 }
 0xbd5   :  { %v768_v38 = vadd.f32 1e-05, %v767_v37 }
 0xbd7   :  { %1280 = vrsqrt.f32 %v768_v38 }
 0xbe1   :  { %v1281_v39 = vpop.eup %1280 }
 0xbe2   :  { %v770_v41 = vmul.f32 %v1281_v39, %v763_v28 }
 0xbe4   :  { %v777_v43 = vmul.f32 %v1022_v40, %v770_v41 }
 0xbe6   :  { %v784_v44 = vadd.f32 %v1023_v42, %v777_v43 }
 0xbe8   :  { %v802_v45 = vpack.c.bf16 %v784_v44, %v784_v44 }
 0xbea   :  { %1205 = vmatmul.mubr.bf16.vlgmr.msra.gmra.mrb[8].mxu1 %v802_v45 }
 0xcbd   :  { %v891_v46 = vpop.f32.mrb[8].mxu1 }
 0xcbe   :  { %v892_v47 = vadd.f32 %v1024_v0, %v891_v46  ;;  %v1206_v48 = vpop.f32.mrb[9].mxu1 }
 0xcbf   :  { %v894_v49 = vpop.f32.mrb[10].mxu1 }
 0xcc0   :  { %v1033_v50 = vmul.f32 -1.442695, %v892_v47  ;;  %v1207_v51 = vpop.f32.mrb[11].mxu1 }
 0xcc2   :  { %1282 = vpow2.f32 %v1033_v50 }
 0xccc   :  { %v1283_v52 = vpop.eup %1282 }
 0xccd   :  { %v900_v53 = vadd.f32 1.0, %v1283_v52 }
 0xccf   :  { %1284 = vrcp.f32 %v900_v53 }
 0xcd9   :  { %v1285_v54 = vpop.eup %1284 }
 0xcda   :  { %903 = vst [vmem:[%s1633_s11] sm:$0xff] %v1285_v54 }

</bundles_post_ra>
